<compile_context>
chip_gen: v5e
topology: v5e:2x2
jax: 0.10.0
libtpu: 0.0.40
codegen_flags: <defaults>
</compile_context>

<pallas_src>
import functools

import jax
import jax.numpy as jnp
from jax.experimental import pallas as pl
from jax.experimental.pallas import tpu as pltpu


def _unity_loss_kernel(x_ref, ut_ref, gt_ref, o_ref, acc_mse_ref, acc_gate_ref, *,
                       n_rows, tile_rows, n_unit, tiles_per_shard, has_ragged):
    TR = tile_rows
    NU = n_unit
    shard = pl.program_id(0)
    step = pl.program_id(1)

    @pl.when(step == 0)
    def _init():
        acc_mse_ref[...] = jnp.zeros_like(acc_mse_ref)
        acc_gate_ref[...] = jnp.zeros_like(acc_gate_ref)

    # Native-dtype tiles are DMA'd; upcast to f32 only inside the kernel.
    x = x_ref[...].astype(jnp.float32)      # (TR, F)   model output rows
    ut = ut_ref[...].astype(jnp.float32)    # (TR, NU)  unit targets
    y = gt_ref[0].astype(jnp.float32)       # (1, TR)   lane-dense gate targets

    def gate_row_terms(xg_row):
        # Numerically stable BCE-with-logits on a lane-dense (1, TR) row:
        #   max(x,0) + log(1+exp(-|x|)) - x*y
        # The x*y cross term is a plain elementwise multiply against the
        # lane-dense target row (no MXU dot, no relayout of y needed).
        sp = jnp.maximum(xg_row, 0.0) + jnp.log(1.0 + jnp.exp(-jnp.abs(xg_row)))
        return sp - xg_row * y

    def accumulate(sq, gate_row):
        # Row-grouped MSE partial: (TR, NU) -> (TR//8, 8, NU) is a layout-free
        # sublane split; the axis-0 sum is pure VALU.  No per-step cross-lane
        # reduction and no scalar loop-carried dependency.
        grp = jnp.sum(sq.reshape(TR // 8, 8, NU), axis=0)        # (8, NU)
        acc_mse_ref[:, :NU] = acc_mse_ref[:, :NU] + grp
        acc_gate_ref[...] = acc_gate_ref[...] + gate_row         # (1, TR)

    row0 = (shard * tiles_per_shard + step) * TR

    if has_ragged:
        is_ragged = row0 + TR > n_rows

        @pl.when(jnp.logical_not(is_ragged))
        def _full_tile():
            # Mask-free fast path: every tile except (possibly) the last one.
            diff = x[:, :NU] - ut
            xg_row = x[:, NU:].reshape(1, TR)      # lane-dense relayout (XLU)
            accumulate(diff * diff, gate_row_terms(xg_row))

        @pl.when(is_ragged)
        def _ragged_tile():
            # Last (or fully padded) tile: mask rows past n_rows.
            row_ok = (jax.lax.broadcasted_iota(jnp.int32, (TR, 1), 0) + row0) < n_rows
            lane_ok = (jax.lax.broadcasted_iota(jnp.int32, (1, TR), 1) + row0) < n_rows
            diff = x[:, :NU] - ut
            sq = jnp.where(row_ok, diff * diff, 0.0)
            # Mask the gate logits BEFORE exp/log so garbage VMEM past the end
            # of the array can never poison the sums; re-mask the result too.
            xg_row = jnp.where(lane_ok, x[:, NU:].reshape(1, TR), 0.0)
            accumulate(sq, jnp.where(lane_ok, gate_row_terms(xg_row), 0.0))
    else:
        diff = x[:, :NU] - ut
        xg_row = x[:, NU:].reshape(1, TR)
        accumulate(diff * diff, gate_row_terms(xg_row))

    @pl.when(step == tiles_per_shard - 1)
    def _finish():
        mse_total = jnp.sum(acc_mse_ref[...])
        gate_total = jnp.sum(acc_gate_ref[...])
        total = (mse_total * (1.0 / float(n_rows * NU))
                 + gate_total * (1.0 / float(n_rows)))
        o_ref[...] = jnp.full((1, 8, 128), total, dtype=jnp.float32)


def unity_loss(model_output, unit_target, gate_target, *, tile_rows=None):
    """JAX/Pallas equivalent of UnitYLoss.forward(model_output, (unit_target, gate_target))."""
    model_output = jnp.asarray(model_output)
    B, S, F = model_output.shape
    assert F >= 2, "need at least one unit feature plus the gate logit"
    N = B * S
    NU = F - 1

    # Contiguous (N, F) view of model_output: free reshape, native dtype, no copy.
    x2d = model_output.reshape(N, F)

    # ---- unit target plumbing (mirrors the PyTorch resize logic, static shapes) ----
    ut = jnp.asarray(unit_target).reshape(-1)
    req = N * NU
    if ut.shape[0] > req:
        # TODO(synk): PyTorch slices dim 0 of the original-shaped target here; with
        # matching element counts (the normal case) the semantics are identical.
        ut = ut[:req]
    elif ut.shape[0] < req:
        ut = jnp.concatenate([ut, jnp.zeros((req - ut.shape[0],), ut.dtype)])
    ut2d = ut.reshape(N, NU)

    # ---- gate target plumbing (tiny array: f32 cast / tile / pad is negligible) ----
    gt = jnp.asarray(gate_target).reshape(-1).astype(jnp.float32)
    if gt.shape[0] > N:
        gt = gt[:N]
    elif gt.shape[0] < N:
        rep, rem = N // gt.shape[0], N % gt.shape[0]
        gt = jnp.concatenate([jnp.tile(gt, rep), gt[:rem]])

    # ---- row-tile size: VMEM-resident (lane-padded) accounting, double-buffered ----
    LANE = 128
    F_pad = -(-F // LANE) * LANE
    NU_pad = -(-NU // LANE) * LANE
    if tile_rows is None:
        per_row = (2 * (F_pad * model_output.dtype.itemsize
                        + NU_pad * ut2d.dtype.itemsize)   # x + unit tiles, double-buffered
                   + 3 * 8 * 4)                           # gate tile (x2) + gate accumulator
        TR = (20 * 1024 * 1024) // max(per_row, 1)        # ~20 MiB of the 32 MiB scoped VMEM
    else:
        TR = int(tile_rows)
    TR = max(8, min(8192, TR))
    TR = (TR // 8) * 8
    if TR >= N:
        TR = -(-N // 8) * 8                               # single tile covering all rows
    num_tiles = -(-N // TR)

    # Two row-tile shards -> the two TensorCores on v7x (serial, harmless on 1-TC chips).
    NC = 2 if num_tiles >= 2 else 1
    T = -(-num_tiles // NC)
    n_pad = NC * T * TR
    has_ragged = (n_pad != N)
    last_blk = num_tiles - 1

    # Lane-dense gate targets: one (1, TR) row vector per tile.
    gt = jnp.pad(gt, (0, n_pad - N)).reshape(NC * T, 1, TR)

    kernel = functools.partial(_unity_loss_kernel, n_rows=N, tile_rows=TR,
                               n_unit=NU, tiles_per_shard=T, has_ragged=has_ragged)

    def row_map(c, i):
        # Clamp fully-out-of-range tiles (possible when num_tiles is odd) back to
        # the last valid block; their contribution is masked to zero in-kernel.
        return (jnp.minimum(c * T + i, last_blk), 0)

    cost = pl.CostEstimate(
        flops=3 * N * NU + 10 * N,
        transcendentals=2 * N,
        bytes_accessed=(N * F * model_output.dtype.itemsize
                        + N * NU * ut2d.dtype.itemsize + n_pad * 4 + NC * 4 * 1024))

    out = pl.pallas_call(
        kernel,
        out_shape=jax.ShapeDtypeStruct((NC, 8, 128), jnp.float32),
        grid=(NC, T),
        in_specs=[
            pl.BlockSpec((TR, F), row_map),                            # model_output rows
            pl.BlockSpec((TR, NU), row_map),                           # unit targets
            pl.BlockSpec((1, 1, TR), lambda c, i: (c * T + i, 0, 0)),  # gate targets (lane-dense)
        ],
        out_specs=pl.BlockSpec((1, 8, 128), lambda c, i: (c, 0, 0)),
        scratch_shapes=[
            pltpu.VMEM((8, NU_pad), jnp.float32),   # MSE partial sums (per shard)
            pltpu.VMEM((1, TR), jnp.float32),       # gate/BCE partial sums (per shard)
        ],
        compiler_params=pltpu.CompilerParams(
            dimension_semantics=("parallel", "arbitrary"),
            vmem_limit_bytes=32 * 1024 * 1024),
        cost_estimate=cost,
    )(x2d, ut2d, gt)
    # Per-shard normalized partial losses -> final scalar.
    return jnp.sum(out[:, 0, 0])


def _reference_loss(model_output, unit_target, gate_target):
    """Pure-JAX reference for correctness checking (matches the PyTorch module)."""
    B, S, F = model_output.shape
    N = B * S
    x = model_output[:, :, -1].reshape(N, 1).astype(jnp.float32)
    y = gate_target.reshape(N, 1).astype(jnp.float32)
    bce = jnp.mean(jnp.maximum(x, 0.0) - x * y + jnp.log1p(jnp.exp(-jnp.abs(x))))
    uo = model_output[:, :, :-1].reshape(N, F - 1).astype(jnp.float32)
    ut = unit_target.reshape(N, F - 1).astype(jnp.float32)
    mse = jnp.mean((uo - ut) ** 2)
    return mse + bce


if __name__ == "__main__":
    key = jax.random.PRNGKey(0)
    k1, k2, k3 = jax.random.split(key, 3)

    B, S, F = 4, 50, 33          # 32 unit features + 1 gate logit; N = 200 rows
    model_output = jax.random.normal(k1, (B, S, F), dtype=jnp.float32)
    unit_target = jax.random.normal(k2, (B, S, F - 1), dtype=jnp.float32)
    gate_target = (jax.random.uniform(k3, (B, S)) > 0.5).astype(jnp.float32)

    ref = _reference_loss(model_output, unit_target, gate_target)

    # 1) default tiling: single full tile, mask-free fast path
    loss = jax.block_until_ready(unity_loss(model_output, unit_target, gate_target))
    assert jnp.allclose(loss, ref, rtol=1e-4, atol=1e-5), (loss, ref)

    # 2) forced multi-tile path (N=200, TR=64 -> 4 tiles over 2 shards, ragged last tile)
    loss_tiled = jax.block_until_ready(
        unity_loss(model_output, unit_target, gate_target, tile_rows=64))
    assert jnp.allclose(loss_tiled, ref, rtol=1e-4, atol=1e-5), (loss_tiled, ref)

    # 3) odd tile count (N=200, TR=72 -> 3 tiles over 2 shards + one fully padded tile)
    loss_odd = jax.block_until_ready(
        unity_loss(model_output, unit_target, gate_target, tile_rows=72))
    assert jnp.allclose(loss_odd, ref, rtol=1e-4, atol=1e-5), (loss_odd, ref)

    # 4) bf16 inputs are DMA'd as bf16 and upcast in-kernel
    mo_bf = model_output.astype(jnp.bfloat16)
    ut_bf = unit_target.astype(jnp.bfloat16)
    ref_bf = _reference_loss(mo_bf, ut_bf, gate_target)
    loss_bf = jax.block_until_ready(
        unity_loss(mo_bf, ut_bf, gate_target, tile_rows=64))
    assert jnp.allclose(loss_bf, ref_bf, rtol=5e-3, atol=1e-3), (loss_bf, ref_bf)

    print("KERNEL_OK")
</pallas_src>

<mosaic_0001>
module attributes {stable_mosaic.version = 11 : i64} {
  func.func @_unity_loss_kernel(%arg0: i32, %arg1: i32, %arg2: memref<200x33xf32, #tpu.memory_space<vmem>>, %arg3: memref<200x32xf32, #tpu.memory_space<vmem>>, %arg4: memref<1x1x200xf32, #tpu.memory_space<vmem>>, %arg5: memref<1x8x128xf32, #tpu.memory_space<vmem>>, %arg6: memref<8x128xf32, #tpu.memory_space<vmem>>, %arg7: memref<1x200xf32, #tpu.memory_space<vmem>>) attributes {dimension_semantics = [#tpu.dimension_semantics<parallel>, #tpu.dimension_semantics<arbitrary>], iteration_bounds = array<i64: 1, 1>, scalar_prefetch = 0 : i64, scratch_operands = 2 : i64, tpu.core_type = #tpu.core_type<tc>, window_params = [{transform_indices = @transform_0, window_bounds = array<i64: 200, 33>}, {transform_indices = @transform_1, window_bounds = array<i64: 200, 32>}, {transform_indices = @transform_2, window_bounds = array<i64: 1, 1, 200>}, {transform_indices = @transform_3, window_bounds = array<i64: 1, 8, 128>}]} {
    %c0_i32 = arith.constant 0 : i32
    %0 = arith.cmpi eq, %arg1, %c0_i32 : i32
    %1 = arith.extui %0 : i1 to i32
    %c0_i32_0 = arith.constant 0 : i32
    %2 = arith.cmpi ne, %1, %c0_i32_0 : i32
    scf.if %2 {
      %cst_20 = arith.constant 0.000000e+00 : f32
      %35 = vector.broadcast %cst_20 : f32 to vector<8x128xf32>
      %c0_21 = arith.constant 0 : index
      %c0_22 = arith.constant 0 : index
      %36 = vector.load %arg6[%c0_21, %c0_22] : memref<8x128xf32, #tpu.memory_space<vmem>>, vector<8x128xf32>
      tpu.vector_store %arg6[%c0_21, %c0_22], %35 {strides = array<i32>} : memref<8x128xf32, #tpu.memory_space<vmem>>, vector<8x128xf32>,
      %cst_23 = arith.constant 0.000000e+00 : f32
      %37 = vector.broadcast %cst_23 : f32 to vector<1x200xf32>
      %c0_24 = arith.constant 0 : index
      %c0_25 = arith.constant 0 : index
      %38 = vector.load %arg7[%c0_24, %c0_25] : memref<1x200xf32, #tpu.memory_space<vmem>>, vector<1x200xf32>
      tpu.vector_store %arg7[%c0_24, %c0_25], %37 {strides = array<i32>} : memref<1x200xf32, #tpu.memory_space<vmem>>, vector<1x200xf32>,
    } else {
    }
    %c0 = arith.constant 0 : index
    %c0_1 = arith.constant 0 : index
    %3 = vector.load %arg2[%c0, %c0_1] : memref<200x33xf32, #tpu.memory_space<vmem>>, vector<200x33xf32>
    %c0_2 = arith.constant 0 : index
    %c0_3 = arith.constant 0 : index
    %4 = vector.load %arg3[%c0_2, %c0_3] : memref<200x32xf32, #tpu.memory_space<vmem>>, vector<200x32xf32>
    %c0_4 = arith.constant 0 : index
    %c0_5 = arith.constant 0 : index
    %c0_6 = arith.constant 0 : index
    %5 = vector.load %arg4[%c0_4, %c0_5, %c0_6] : memref<1x1x200xf32, #tpu.memory_space<vmem>>, vector<1x1x200xf32>
    %6 = vector.shape_cast %5 : vector<1x1x200xf32> to vector<1x200xf32>
    %7 = vector.extract_strided_slice %3 {offsets = [0, 0], sizes = [200, 32], strides = [1, 1]} : vector<200x33xf32> to vector<200x32xf32>
    %8 = arith.subf %7, %4 : vector<200x32xf32>
    %9 = vector.extract_strided_slice %3 {offsets = [0, 32], sizes = [200, 1], strides = [1, 1]} : vector<200x33xf32> to vector<200x1xf32>
    %10 = vector.shape_cast %9 : vector<200x1xf32> to vector<1x200xf32>
    %11 = arith.mulf %8, %8 : vector<200x32xf32>
    %cst = arith.constant 0.000000e+00 : f32
    %12 = vector.broadcast %cst : f32 to vector<1x200xf32>
    %13 = arith.maximumf %10, %12 : vector<1x200xf32>
    %14 = math.absf %10 : vector<1x200xf32>
    %cst_7 = arith.constant 0.000000e+00 : f32
    %15 = vector.broadcast %cst_7 : f32 to vector<1x200xf32>
    %16 = arith.subf %15, %14 : vector<1x200xf32>
    %17 = math.exp %16 : vector<1x200xf32>
    %cst_8 = arith.constant 1.000000e+00 : f32
    %18 = vector.broadcast %cst_8 : f32 to vector<1x200xf32>
    %19 = arith.addf %18, %17 : vector<1x200xf32>
    %20 = math.log %19 : vector<1x200xf32>
    %21 = arith.addf %13, %20 : vector<1x200xf32>
    %22 = arith.mulf %10, %6 : vector<1x200xf32>
    %23 = arith.subf %21, %22 : vector<1x200xf32>
    %24 = vector.shape_cast %11 : vector<200x32xf32> to vector<25x8x32xf32>
    %cst_9 = arith.constant dense<0.000000e+00> : vector<8x32xf32>
    %25 = vector.multi_reduction <add>, %24, %cst_9 [0] : vector<25x8x32xf32> to vector<8x32xf32>
    %c0_10 = arith.constant 0 : index
    %c0_11 = arith.constant 0 : index
    %26 = vector.load %arg6[%c0_10, %c0_11] : memref<8x128xf32, #tpu.memory_space<vmem>>, vector<8x32xf32>
    %27 = arith.addf %26, %25 : vector<8x32xf32>
    %c0_12 = arith.constant 0 : index
    %c0_13 = arith.constant 0 : index
    %28 = vector.load %arg6[%c0_12, %c0_13] : memref<8x128xf32, #tpu.memory_space<vmem>>, vector<8x32xf32>
    tpu.vector_store %arg6[%c0_12, %c0_13], %27 {strides = array<i32>} : memref<8x128xf32, #tpu.memory_space<vmem>>, vector<8x32xf32>,
    %c0_14 = arith.constant 0 : index
    %c0_15 = arith.constant 0 : index
    %29 = vector.load %arg7[%c0_14, %c0_15] : memref<1x200xf32, #tpu.memory_space<vmem>>, vector<1x200xf32>
    %30 = arith.addf %29, %23 : vector<1x200xf32>
    %c0_16 = arith.constant 0 : index
    %c0_17 = arith.constant 0 : index
    %31 = vector.load %arg7[%c0_16, %c0_17] : memref<1x200xf32, #tpu.memory_space<vmem>>, vector<1x200xf32>
    tpu.vector_store %arg7[%c0_16, %c0_17], %30 {strides = array<i32>} : memref<1x200xf32, #tpu.memory_space<vmem>>, vector<1x200xf32>,
    %c0_i32_18 = arith.constant 0 : i32
    %32 = arith.cmpi eq, %arg1, %c0_i32_18 : i32
    %33 = arith.extui %32 : i1 to i32
    %c0_i32_19 = arith.constant 0 : i32
    %34 = arith.cmpi ne, %33, %c0_i32_19 : i32
    scf.if %34 {
      %c0_20 = arith.constant 0 : index
      %c0_21 = arith.constant 0 : index
      %35 = vector.load %arg6[%c0_20, %c0_21] : memref<8x128xf32, #tpu.memory_space<vmem>>, vector<8x128xf32>
      %36 = vector.shape_cast %35 : vector<8x128xf32> to vector<1x8x128xf32>
      %cst_22 = arith.constant dense<0.000000e+00> : vector<1xf32>
      %37 = vector.multi_reduction <add>, %36, %cst_22 [1, 2] : vector<1x8x128xf32> to vector<1xf32>
      %38 = vector.shape_cast %37 : vector<1xf32> to vector<1x1x1xf32>
      %39 = vector.extract %38[0, 0, 0] : f32 from vector<1x1x1xf32>
      %c0_23 = arith.constant 0 : index
      %c0_24 = arith.constant 0 : index
      %40 = vector.load %arg7[%c0_23, %c0_24] : memref<1x200xf32, #tpu.memory_space<vmem>>, vector<1x200xf32>
      %41 = vector.shape_cast %40 : vector<1x200xf32> to vector<1x1x200xf32>
      %cst_25 = arith.constant dense<0.000000e+00> : vector<1xf32>
      %42 = vector.multi_reduction <add>, %41, %cst_25 [1, 2] : vector<1x1x200xf32> to vector<1xf32>
      %43 = vector.shape_cast %42 : vector<1xf32> to vector<1x1x1xf32>
      %44 = vector.extract %43[0, 0, 0] : f32 from vector<1x1x1xf32>
      %cst_26 = arith.constant 1.562500e-04 : f32
      %45 = arith.mulf %39, %cst_26 : f32
      %cst_27 = arith.constant 5.000000e-03 : f32
      %46 = arith.mulf %44, %cst_27 : f32
      %47 = arith.addf %45, %46 : f32
      %48 = vector.broadcast %47 : f32 to vector<1x8x128xf32>
      %c0_28 = arith.constant 0 : index
      %c0_29 = arith.constant 0 : index
      %c0_30 = arith.constant 0 : index
      %49 = vector.load %arg5[%c0_28, %c0_29, %c0_30] : memref<1x8x128xf32, #tpu.memory_space<vmem>>, vector<1x8x128xf32>
      tpu.vector_store %arg5[%c0_28, %c0_29, %c0_30], %48 {strides = array<i32>} : memref<1x8x128xf32, #tpu.memory_space<vmem>>, vector<1x8x128xf32>,
    } else {
    }
    return
  }
  func.func @transform_0(%arg0: i32, %arg1: i32) -> (i32, i32) {
    %c1_i32 = arith.constant 1 : i32
    %0 = arith.muli %arg0, %c1_i32 : i32
    %1 = arith.addi %0, %arg1 : i32
    %c0_i32 = arith.constant 0 : i32
    %2 = arith.minsi %1, %c0_i32 : i32
    %c0_i32_0 = arith.constant 0 : i32
    %c0_i32_1 = arith.constant 0 : i32
    return %2, %c0_i32_0 : i32, i32
  }
  func.func @transform_1(%arg0: i32, %arg1: i32) -> (i32, i32) {
    %c1_i32 = arith.constant 1 : i32
    %0 = arith.muli %arg0, %c1_i32 : i32
    %1 = arith.addi %0, %arg1 : i32
    %c0_i32 = arith.constant 0 : i32
    %2 = arith.minsi %1, %c0_i32 : i32
    %c0_i32_0 = arith.constant 0 : i32
    %c0_i32_1 = arith.constant 0 : i32
    return %2, %c0_i32_0 : i32, i32
  }
  func.func @transform_2(%arg0: i32, %arg1: i32) -> (i32, i32, i32) {
    %c1_i32 = arith.constant 1 : i32
    %0 = arith.muli %arg0, %c1_i32 : i32
    %1 = arith.addi %0, %arg1 : i32
    %c0_i32 = arith.constant 0 : i32
    %c0_i32_0 = arith.constant 0 : i32
    %c0_i32_1 = arith.constant 0 : i32
    return %1, %c0_i32, %c0_i32_0 : i32, i32, i32
  }
  func.func @transform_3(%arg0: i32, %arg1: i32) -> (i32, i32, i32) {
    %c0_i32 = arith.constant 0 : i32
    %c0_i32_0 = arith.constant 0 : i32
    %c0_i32_1 = arith.constant 0 : i32
    return %arg0, %c0_i32, %c0_i32_0 : i32, i32, i32
  }
}

</mosaic_0001>

<bundles_post_ra>
// kernel: tpu_custom_call.1
= control target key start
LH: loop header
LB: loop body
LE: loop exit
PB: predicated region body
PF: predicated region fallthrough
CT: control target
= control target key end

     0   :  { %v101_v0 = vlaneseq  ;;  %s2001_s0 = inlined_call_operand.vmem [shape: f32[200,33], index: 0, kind: input, shape index: {}]   ;;  %s2002_s1 = inlined_call_operand.vmem [shape: f32[200,32], index: 1, kind: input, shape index: {}]   ;;  %s2003_s2 = inlined_call_operand.vmem [shape: f32[1,1,200], index: 2, kind: input, shape index: {}]   ;;  %s2004_s3 = inlined_call_operand.hbm [shape: f32[1,8,128], index: 3, kind: output, shape index: {}]  }
   0x1   :  { %8 = vsyncpa [#allocation5], 0  ;;  %v156_v4 = vld [vmem:[%s2003_s2] sm:$0x3]  ;;  %v1591_v23 = vld [vmem:[%s2001_s0 + $0x8] sm:$0xff]  ;;  %vm660_vm0 = vcmask 261120  }
   0x2   :  { %v436_v1 = vshrl.u32 %v101_v0, 7  ;;  %v433_v5 = vperm.slane %v156_v4, 0  ;;  %v106_v19 = vld [vmem:[%s2001_s0] sm:$0xff]  ;;  %v1593_v24 = vperm.slane %v156_v4, 1  ;;  %v233_v25 = vand.u32 2147483647, %v1591_v23 }
   0x3   :  { %v232_v20 = vand.u32 2147483647, %v106_v19  ;;  %v131_v27 = vld [vmem:[%s2002_s1] sm:$0xff]  ;;  %v1605_v32 = vld [vmem:[%s2001_s0 + $0x10] sm:$0xff]  ;;  %v132_v34 = vld [vmem:[%s2002_s1 + $0x8] sm:$0xff]  ;;  %v207_v44 = vmax.f32 %v106_v19, 0.0 }
   0x4   :  { %1389 = vset.pattern.permute.xlu0 %v436_v1  ;;  %v1567_v2 = vadd.s32 32, %v436_v1  ;;  %v449_v3 = vadd.s32 16, %v436_v1  ;;  %v443_v6 = vadd.s32 8, %v436_v1  ;;  %v1573_v7 = vadd.s32 40, %v436_v1  ;;  %v1622_v50 = vld [vmem:[%s2001_s0 + $0x18] sm:$0xff]  ;;  %v133_v57 = vld [vmem:[%s2002_s1 + $0x10] sm:$0xff] }
   0x5   :  { %v1575_v8 = vadd.s32 24, %v436_v1  ;;  %v479_v9 = vadd.s32 56, %v436_v1  ;;  %v1579_v10 = vadd.s32 48, %v436_v1  ;;  %v1582_v11 = vadd.s32 64, %v436_v1  ;;  %s1355_s30 = sshll.u32 %s2004_s3, 4  ;;  %s1545_s7 = smov [#allocation4]   ;;  %s1356_s30 = int_to_ptr.hbm [resolvable:$true] %s1355_s30 }
   0x6   :  { %1393 = vset.pattern.permute.xlu2 %v1567_v2  ;;  %1391 = vset.pattern.permute.xlu1 %v449_v3  ;;  %v497_v12 = vadd.s32 80, %v436_v1  ;;  %v491_v13 = vadd.s32 72, %v436_v1  ;;  %v509_v14 = vadd.s32 96, %v436_v1  ;;  %v503_v15 = vadd.s32 88, %v436_v1  ;;  %s1353_s8 = sshll.u32 %s1545_s7, 4  ;;  %s1354_s8 = int_to_ptr.vmem [resolvable:$true] %s1353_s8 }
   0x7   :  { %v515_v16 = vadd.s32 104, %v436_v1  ;;  %v527_v17 = vadd.s32 120, %v436_v1  ;;  %v521_v18 = vadd.s32 112, %v436_v1  ;;  %v257_v21 = vsub.f32 0.0, %v232_v20 }
   0x8   :  { %v258_v28 = vsub.f32 0.0, %v233_v25  ;;  %v157_v30 = vsub.f32 %v106_v19, %v131_v27  ;;  %v234_v35 = vand.u32 2147483647, %v1605_v32  ;;  %v158_v36 = vsub.f32 %v1591_v23, %v132_v34 }
   0x9   :  { %v282_v22 = vmul.f32 1.442695, %v257_v21  ;;  %v235_v53 = vand.u32 2147483647, %v1622_v50  ;;  %v1543_v58 = vmov 32   ;;  %vm1949_vm1 = vcmp.lt.s32.totalorder %v101_v0, 200 }
   0xa   :  { %v284_v31 = vmul.f32 1.442695, %v258_v28  ;;  %v182_v33 = vmul.f32 %v157_v30, %v157_v30  ;;  %v183_v38 = vmul.f32 %v158_v36, %v158_v36  ;;  %v259_v40 = vsub.f32 0.0, %v234_v35 }
   0xb   :  { %1417 = vpow2.f32 %v282_v22  ;;  %v260_v62 = vsub.f32 0.0, %v235_v53  ;;  %v209_v28 = vmax.f32 %v1605_v32, 0.0  ;;  %vm1226_vm2 = vcmask 130112  }
   0xc   :  { %439 = vperm.xlu0 %1389, %v433_v5   ;;  %v661_v37 = vsel %vm660_vm0, %v182_v33, 0.0  ;;  %v662_v41 = vsel %vm660_vm0, %v183_v38, 0.0  ;;  %v286_v46 = vmul.f32 1.442695, %v259_v40  ;;  %vm1230_vm3 = vcmask 195712  }
   0xd   :  { %v663_v42 = vadd.f32 %v662_v41, %v661_v37  ;;  %vm1234_vm4 = vcmask 261312   ;;  %vm1238_vm5 = vcmask 326912   ;;  %vm1242_vm6 = vcmask 392512  }
   0xe   :  { %463 = vperm.xlu2 %1393, %v433_v5   ;;  %451 = vperm.xlu1 %1391, %v433_v5   ;;  %vm1246_vm7 = vcmask 458112   ;;  %vm1250_vm8 = vcmask 523712   ;;  %vm1254_vm9 = vcmask 589312   ;;  %vm1258_vm10 = vcmask 654912  }
   0xf   :  { %vm1262_vm11 = vcmask 720512   ;;  %vm1266_vm12 = vcmask 786112   ;;  %vm1270_vm13 = vcmask 851712   ;;  %vm1274_vm14 = vcmask 917312  }
  0x10   :  { %vm1278_vm15 = vcmask 982912  }
  0x11   :  { %v1418_v26 = vpop.eup %1417 }
  0x12   :  { %v332_v29 = vadd.f32 1.0, %v1418_v26  ;;  %v134_v26 = vld [vmem:[%s2002_s1 + $0x18] sm:$0xff] }
  0x13   :  { %v160_v33 = vsub.f32 %v1622_v50, %v134_v26 }
  0x14   :  { %1390 = vset.pattern.permute.xlu0 %v443_v6  ;;  %1419 = vlog2.f32 %v332_v29 }
  0x15   :  { %1421 = vpow2.f32 %v284_v31  ;;  %v185_v37 = vmul.f32 %v160_v33, %v160_v33  ;;  %v1683_v33 = vld [vmem:[%s2001_s0 + $0x38] sm:$0xff] }
  0x16   :  { %1394 = vset.pattern.permute.xlu2 %v1573_v7  ;;  %1392 = vset.pattern.permute.xlu1 %v1575_v8  ;;  %1423 = vpow2.f32 %v286_v46 }
  0x1a   :  { %v1420_v39 = vpop.eup %1419 }
  0x1b   :  { %v1422_v43 = vpop.eup %1421  ;;  %v358_v45 = vmul.f32 0.6931472, %v1420_v39 }
  0x1c   :  { %445 = vperm.xlu0 %1390, %v433_v5   ;;  %v333_v47 = vadd.f32 1.0, %v1422_v43  ;;  %v1424_v60 = vpop.eup %1423 }
  0x1d   :  { %v407_v48 = vadd.f32 %v358_v45, %v207_v44  ;;  %v334_v4 = vadd.f32 1.0, %v1424_v60 }
  0x1e   :  { %469 = vperm.xlu2 %1394, %v433_v5   ;;  %457 = vperm.xlu1 %1392, %v433_v5   ;;  %1425 = vlog2.f32 %v333_v47 }
  0x1f   :  { %1427 = vlog2.f32 %v334_v4  ;;  %v1669_v4 = vld [vmem:[%s2001_s0 + $0x30] sm:$0xff] }
  0x24   :  { %1397 = vset.pattern.permute.xlu0 %v1582_v11  ;;  %v1426_v63 = vpop.eup %1425 }
  0x26   :  { %1396 = vset.pattern.permute.xlu2 %v479_v9  ;;  %1395 = vset.pattern.permute.xlu1 %v1579_v10 }
  0x2c   :  { %487 = vperm.xlu0 %1397, %v433_v5  }
  0x2e   :  { %481 = vperm.xlu2 %1396, %v433_v5   ;;  %475 = vperm.xlu1 %1395, %v433_v5  }
  0x34   :  { %1402 = vset.pattern.permute.xlu0 %v515_v16 }
  0x36   :  { %1399 = vset.pattern.permute.xlu2 %v497_v12  ;;  %1398 = vset.pattern.permute.xlu1 %v491_v13  ;;  %v1639_v13 = vld [vmem:[%s2001_s0 + $0x20] sm:$0xff] }
  0x37   :  { %v236_v16 = vand.u32 2147483647, %v1639_v13 }
  0x3c   :  { %517 = vperm.xlu0 %1402, %v433_v5  }
  0x3e   :  { %499 = vperm.xlu2 %1399, %v433_v5   ;;  %493 = vperm.xlu1 %1398, %v433_v5  }
  0x44   :  { %1407 = vset.pattern.permute.xlu0 %v449_v3 }
  0x46   :  { %1401 = vset.pattern.permute.xlu2 %v509_v14  ;;  %1400 = vset.pattern.permute.xlu1 %v503_v15 }
  0x4c   :  { %547 = vperm.xlu0 %1407, %v1593_v24  }
  0x4e   :  { %511 = vperm.xlu2 %1401, %v433_v5   ;;  %505 = vperm.xlu1 %1400, %v433_v5  }
  0x54   :  { %1412 = vset.pattern.permute.xlu0 %v479_v9 }
  0x56   :  { %1404 = vset.pattern.permute.xlu2 %v527_v17  ;;  %1403 = vset.pattern.permute.xlu1 %v521_v18  ;;  %v1428_v18 = vpop.eup %1427 }
  0x57   :  { %v362_v30 = vmul.f32 0.6931472, %v1428_v18 }
  0x59   :  { %v409_v39 = vadd.f32 %v362_v30, %v209_v28 }
  0x5c   :  { %577 = vperm.xlu0 %1412, %v1593_v24  }
  0x5e   :  { %529 = vperm.xlu2 %1404, %v433_v5   ;;  %523 = vperm.xlu1 %1403, %v433_v5   ;;  %v208_v5 = vmax.f32 %v1591_v23, 0.0 }
  0x64   :  { %1416 = vset.pattern.permute.xlu0 %v1543_v58 }
  0x66   :  { %1405 = vset.pattern.permute.xlu1 %v436_v1  ;;  %1406 = vset.pattern.permute.xlu2 %v443_v6  ;;  %v360_v6 = vmul.f32 0.6931472, %v1426_v63 }
  0x68   :  { %v408_v12 = vadd.f32 %v360_v6, %v208_v5  ;;  %v238_v5 = vand.u32 2147483647, %v1669_v4  ;;  %v136_v6 = vld [vmem:[%s2002_s1 + $0x28] sm:$0xff] }
  0x6a   :  { %v263_v18 = vsub.f32 0.0, %v238_v5 }
  0x6e   :  { %535 = vperm.xlu1 %1405, %v1593_v24   ;;  %541 = vperm.xlu2 %1406, %v1593_v24  }
  0x76   :  { %1408 = vset.pattern.permute.xlu1 %v1575_v8  ;;  %1409 = vset.pattern.permute.xlu2 %v1567_v2  ;;  %v159_v2 = vsub.f32 %v1605_v32, %v133_v57  ;;  %v288_v8 = vmul.f32 1.442695, %v260_v62 }
  0x78   :  { %v184_v9 = vmul.f32 %v159_v2, %v159_v2  ;;  %1429 = vpow2.f32 %v288_v8 }
  0x7e   :  { %v440_v49 = vpop.permute.xlu0 %439  ;;  %553 = vperm.xlu1 %1408, %v1593_v24   ;;  %559 = vperm.xlu2 %1409, %v1593_v24   ;;  %v1430_v20 = vpop.eup %1429 }
  0x7f   :  { %v610_v51 = vmul.f32 %v440_v49, %v106_v19  ;;  %v335_v34 = vadd.f32 1.0, %v1430_v20 }
  0x80   :  { %v452_v35 = vpop.permute.xlu1 %451 }
  0x81   :  { %v635_v52 = vsub.f32 %v407_v48, %v610_v51  ;;  %v612_v40 = vmul.f32 %v452_v35, %v1605_v32  ;;  %1431 = vlog2.f32 %v335_v34  ;;  %v135_v32 = vld [vmem:[%s2002_s1 + $0x20] sm:$0xff]  ;;  %v210_v51 = vmax.f32 %v1622_v50, 0.0 }
  0x82   :  { %v239_v35 = vand.u32 2147483647, %v1683_v33 }
  0x83   :  { %v739_v54 = vrot.slane %v635_v52, 1  ;;  %v740_v55 = vrot.slane %v635_v52, 2  ;;  %v741_v56 = vrot.slane %v635_v52, 3  ;;  %914 = vst [vmem:[#allocation1] ss:$9 sm:$0xff] %v635_v52  ;;  %v742_v59 = vrot.slane %v635_v52, 4 }
  0x84   :  { %v743_v61 = vrot.slane %v635_v52, 5  ;;  %v744_v1 = vrot.slane %v635_v52, 6  ;;  %v745_v3 = vrot.slane %v635_v52, 7  ;;  %v637_v43 = vsub.f32 %v409_v39, %v612_v40 }
  0x85   :  { %916 = vst [vmem:[#allocation1 + $0x1] ss:$9 sm:$0xff] %v739_v54 }
  0x86   :  { %918 = vst [vmem:[#allocation1 + $0x2] ss:$9 sm:$0xff] %v740_v55  ;;  %1410 = vset.pattern.permute.xlu1 %v1573_v7  ;;  %1411 = vset.pattern.permute.xlu2 %v1579_v10  ;;  %v664_v7 = vsel %vm660_vm0, %v184_v9, 0.0  ;;  %v753_v46 = vrot.slane %v637_v43, 1  ;;  %v754_v47 = vrot.slane %v637_v43, 2  ;;  %v755_v54 = vrot.slane %v637_v43, 3 }
  0x87   :  { %920 = vst [vmem:[#allocation1 + $0x3] ss:$9 sm:$0xff] %v741_v56  ;;  %v665_v17 = vadd.f32 %v664_v7, %v663_v42  ;;  %v1655_v42 = vld [vmem:[%s2001_s0 + $0x28] sm:$0xff]  ;;  %v1432_v45 = vpop.eup %1431  ;;  %v756_v56 = vrot.slane %v637_v43, 4  ;;  %v757_v57 = vrot.slane %v637_v43, 5  ;;  %v758_v60 = vrot.slane %v637_v43, 6 }
  0x88   :  { %922 = vst [vmem:[#allocation1 + $0x4] ss:$9 sm:$0xff] %v742_v59  ;;  %v237_v44 = vand.u32 2147483647, %v1655_v42  ;;  %v364_v52 = vmul.f32 0.6931472, %v1432_v45  ;;  %v162_v7 = vsub.f32 %v1655_v42, %v136_v6 }
  0x89   :  { %924 = vst [vmem:[#allocation1 + $0x5] ss:$9 sm:$0xff] %v743_v61  ;;  %v264_v45 = vsub.f32 0.0, %v239_v35  ;;  %v214_v35 = vmax.f32 %v1683_v33, 0.0 }
  0x8a   :  { %926 = vst [vmem:[#allocation1 + $0x6] ss:$9 sm:$0xff] %v744_v1  ;;  %v262_v53 = vsub.f32 0.0, %v237_v44  ;;  %v410_v61 = vadd.f32 %v364_v52, %v210_v51  ;;  %v759_v1 = vrot.slane %v637_v43, 7 }
  0x8b   :  { %928 = vst [vmem:[#allocation1 + $0x7] ss:$9 sm:$0xff] %v745_v3 }
  0x8c   :  { %v292_v63 = vmul.f32 1.442695, %v262_v53 }
  0x8e   :  { %565 = vperm.xlu1 %1410, %v1593_v24   ;;  %571 = vperm.xlu2 %1411, %v1593_v24   ;;  %v446_v10 = vpop.permute.xlu0 %445 }
  0x8f   :  { %v611_v14 = vmul.f32 %v446_v10, %v1591_v23  ;;  %v261_v23 = vsub.f32 0.0, %v236_v16 }
  0x90   :  { %v458_v55 = vpop.permute.xlu1 %457 }
  0x91   :  { %v636_v15 = vsub.f32 %v408_v12, %v611_v14  ;;  %v290_v38 = vmul.f32 1.442695, %v261_v23  ;;  %v613_v62 = vmul.f32 %v458_v55, %v1622_v50  ;;  %v294_v23 = vmul.f32 1.442695, %v263_v18 }
  0x92   :  { %v929_v19 = vld [vmem:[#allocation1] sm:$0xff]  ;;  %v296_v55 = vmul.f32 1.442695, %v264_v45 }
  0x93   :  { %v746_v21 = vrot.slane %v636_v15, 1  ;;  %v747_v22 = vrot.slane %v636_v15, 2  ;;  %v748_v25 = vrot.slane %v636_v15, 3  ;;  %930 = vst [vmem:[#allocation1] ss:$9 sm:$0xff] %v636_v15  ;;  %v749_v27 = vrot.slane %v636_v15, 4 }
  0x94   :  { %v750_v29 = vrot.slane %v636_v15, 5  ;;  %v751_v31 = vrot.slane %v636_v15, 6  ;;  %v752_v36 = vrot.slane %v636_v15, 7  ;;  %1433 = vpow2.f32 %v290_v38 }
  0x95   :  { %931 = vst [vmem:[#allocation1 + $0x1] ss:$9 sm:$0xff] %v746_v21  ;;  %v638_v3 = vsub.f32 %v410_v61, %v613_v62  ;;  %v211_v21 = vmax.f32 %v1639_v13, 0.0 }
  0x96   :  { %932 = vst [vmem:[#allocation1 + $0x2] ss:$9 sm:$0xff] %v747_v22  ;;  %1413 = vset.pattern.permute.xlu1 %v1582_v11  ;;  %1414 = vset.pattern.permute.xlu2 %v1543_v58  ;;  %v666_v11 = vsel %vm660_vm0, %v185_v37, 0.0  ;;  %v137_v37 = vld [vmem:[%s2002_s1 + $0x30] sm:$0xff] }
  0x97   :  { %933 = vst [vmem:[#allocation1 + $0x3] ss:$9 sm:$0xff] %v748_v25  ;;  %1147 = vperm.xlu2 %1414, %v929_v19   ;;  %v667_v41 = vadd.f32 %v666_v11, %v665_v17  ;;  %v760_v50 = vrot.slane %v638_v3, 1  ;;  %v761_v12 = vrot.slane %v638_v3, 2  ;;  %v762_v15 = vrot.slane %v638_v3, 3 }
  0x98   :  { %934 = vst [vmem:[#allocation1 + $0x4] ss:$9 sm:$0xff] %v749_v27  ;;  %v763_v16 = vrot.slane %v638_v3, 4  ;;  %v187_v17 = vmul.f32 %v162_v7, %v162_v7  ;;  %v764_v20 = vrot.slane %v638_v3, 5  ;;  %v765_v22 = vrot.slane %v638_v3, 6  ;;  %v464_v27 = vpop.permute.xlu2 %463 }
  0x99   :  { %935 = vst [vmem:[#allocation1 + $0x5] ss:$9 sm:$0xff] %v750_v29  ;;  %v766_v28 = vrot.slane %v638_v3, 7  ;;  %v163_v38 = vsub.f32 %v1669_v4, %v137_v37 }
  0x9a   :  { %936 = vst [vmem:[#allocation1 + $0x6] ss:$9 sm:$0xff] %v751_v31  ;;  %v1434_v49 = vpop.eup %1433  ;;  %v670_v26 = vsel %vm660_vm0, %v187_v17, 0.0  ;;  %v614_v31 = vmul.f32 %v464_v27, %v1639_v13 }
  0x9b   :  { %937 = vst [vmem:[#allocation1 + $0x7] ss:$9 sm:$0xff] %v752_v36  ;;  %v336_v59 = vadd.f32 1.0, %v1434_v49  ;;  %v188_v44 = vmul.f32 %v163_v38, %v163_v38 }
  0x9d   :  { %1435 = vlog2.f32 %v336_v59  ;;  %v672_v49 = vsel %vm660_vm0, %v188_v44, 0.0  ;;  %v1696_v59 = vld [vmem:[%s2001_s0 + $0x40] sm:$0xff] }
  0x9e   :  { %583 = vperm.xlu1 %1413, %v1593_v24   ;;  %v161_v24 = vsub.f32 %v1639_v13, %v135_v32  ;;  %1437 = vpow2.f32 %v292_v63 }
  0xa0   :  { %v186_v2 = vmul.f32 %v161_v24, %v161_v24  ;;  %v476_v7 = vpop.permute.xlu1 %475 }
  0xa2   :  { %v938_v48 = vld [vmem:[#allocation1] sm:$0xff] }
  0xa3   :  { %939 = vst [vmem:[#allocation1] ss:$9 sm:$0xff] %v637_v43  ;;  %v1436_v9 = vpop.eup %1435 }
  0xa4   :  { %940 = vst [vmem:[#allocation1 + $0x1] ss:$9 sm:$0xff] %v753_v46  ;;  %v1438_v10 = vpop.eup %1437  ;;  %v366_v19 = vmul.f32 0.6931472, %v1436_v9  ;;  %v470_v46 = vpop.permute.xlu2 %469 }
  0xa5   :  { %941 = vst [vmem:[#allocation1 + $0x2] ss:$9 sm:$0xff] %v754_v47  ;;  %v337_v25 = vadd.f32 1.0, %v1438_v10  ;;  %v615_v24 = vmul.f32 %v470_v46, %v1655_v42 }
  0xa6   :  { %942 = vst [vmem:[#allocation1 + $0x3] ss:$9 sm:$0xff] %v755_v54  ;;  %1415 = vset.pattern.permute.xlu1 %v1543_v58  ;;  %v668_v58 = vsel %vm660_vm0, %v186_v2, 0.0  ;;  %v411_v30 = vadd.f32 %v366_v19, %v211_v21  ;;  %v616_v19 = vmul.f32 %v476_v7, %v1669_v4  ;;  %v1735_v7 = vld [vmem:[%s2001_s0 + $0x58] sm:$0xff] }
  0xa7   :  { %943 = vst [vmem:[#allocation1 + $0x4] ss:$9 sm:$0xff] %v756_v56  ;;  %1150 = vperm.xlu1 %1415, %v938_v48   ;;  %v669_v8 = vadd.f32 %v668_v58, %v667_v41  ;;  %1439 = vlog2.f32 %v337_v25  ;;  %v212_v41 = vmax.f32 %v1655_v42, 0.0  ;;  %v138_v42 = vld [vmem:[%s2002_s1 + $0x38] sm:$0xff] }
  0xa8   :  { %944 = vst [vmem:[#allocation1 + $0x5] ss:$9 sm:$0xff] %v757_v57  ;;  %1441 = vpow2.f32 %v294_v23  ;;  %v639_v34 = vsub.f32 %v411_v30, %v614_v31 }
  0xa9   :  { %945 = vst [vmem:[#allocation1 + $0x6] ss:$9 sm:$0xff] %v758_v60  ;;  %v671_v29 = vadd.f32 %v670_v26, %v669_v8  ;;  %v240_v60 = vand.u32 2147483647, %v1696_v59 }
  0xaa   :  { %946 = vst [vmem:[#allocation1 + $0x7] ss:$9 sm:$0xff] %v759_v1  ;;  %v767_v39 = vrot.slane %v639_v34, 1  ;;  %v768_v40 = vrot.slane %v639_v34, 2  ;;  %v769_v32 = vrot.slane %v639_v34, 3  ;;  %v770_v47 = vrot.slane %v639_v34, 4 }
  0xab   :  { %v771_v51 = vrot.slane %v639_v34, 5  ;;  %v673_v52 = vadd.f32 %v672_v49, %v671_v29  ;;  %v772_v53 = vrot.slane %v639_v34, 6  ;;  %v773_v56 = vrot.slane %v639_v34, 7 }
  0xac   :  { %v164_v1 = vsub.f32 %v1683_v33, %v138_v42  ;;  %v265_v9 = vsub.f32 0.0, %v240_v60 }
  0xad   :  { %v1440_v36 = vpop.eup %1439 }
  0xae   :  { %v1442_v13 = vpop.eup %1441  ;;  %v368_v43 = vmul.f32 0.6931472, %v1440_v36  ;;  %v189_v8 = vmul.f32 %v164_v1, %v164_v1 }
  0xaf   :  { %v338_v48 = vadd.f32 1.0, %v1442_v13 }
  0xb0   :  { %v412_v54 = vadd.f32 %v368_v43, %v212_v41  ;;  %v482_v43 = vpop.permute.xlu2 %481 }
  0xb1   :  { %v947_v14 = vld [vmem:[#allocation1] sm:$0xff]  ;;  %1443 = vlog2.f32 %v338_v48  ;;  %v1722_v48 = vld [vmem:[%s2001_s0 + $0x50] sm:$0xff] }
  0xb2   :  { %948 = vst [vmem:[#allocation1] ss:$9 sm:$0xff] %v638_v3  ;;  %1153 = vperm.xlu2 %1414, %v947_v14   ;;  %v640_v57 = vsub.f32 %v412_v54, %v615_v24  ;;  %1445 = vpow2.f32 %v296_v55  ;;  %v242_v49 = vand.u32 2147483647, %v1722_v48 }
  0xb3   :  { %949 = vst [vmem:[#allocation1 + $0x1] ss:$9 sm:$0xff] %v760_v50  ;;  %v213_v50 = vmax.f32 %v1669_v4, 0.0  ;;  %v139_v4 = vld [vmem:[%s2002_s1 + $0x40] sm:$0xff] }
  0xb4   :  { %950 = vst [vmem:[#allocation1 + $0x2] ss:$9 sm:$0xff] %v761_v12  ;;  %v774_v62 = vrot.slane %v640_v57, 1  ;;  %v775_v63 = vrot.slane %v640_v57, 2  ;;  %v776_v58 = vrot.slane %v640_v57, 3  ;;  %v777_v5 = vrot.slane %v640_v57, 4 }
  0xb5   :  { %951 = vst [vmem:[#allocation1 + $0x3] ss:$9 sm:$0xff] %v762_v15  ;;  %v778_v12 = vrot.slane %v640_v57, 5  ;;  %v779_v10 = vrot.slane %v640_v57, 6  ;;  %v674_v15 = vsel %vm660_vm0, %v189_v8, 0.0  ;;  %v165_v29 = vsub.f32 %v1696_v59, %v139_v4 }
  0xb6   :  { %952 = vst [vmem:[#allocation1 + $0x4] ss:$9 sm:$0xff] %v763_v16  ;;  %v780_v16 = vrot.slane %v640_v57, 7  ;;  %v675_v17 = vadd.f32 %v674_v15, %v673_v52  ;;  %v267_v60 = vsub.f32 0.0, %v242_v49 }
  0xb7   :  { %953 = vst [vmem:[#allocation1 + $0x5] ss:$9 sm:$0xff] %v764_v20  ;;  %v1444_v61 = vpop.eup %1443  ;;  %v298_v20 = vmul.f32 1.442695, %v265_v9  ;;  %v190_v37 = vmul.f32 %v165_v29, %v165_v29 }
  0xb8   :  { %954 = vst [vmem:[#allocation1 + $0x6] ss:$9 sm:$0xff] %v765_v22  ;;  %v1446_v2 = vpop.eup %1445  ;;  %v370_v6 = vmul.f32 0.6931472, %v1444_v61  ;;  %v1709_v22 = vld [vmem:[%s2001_s0 + $0x48] sm:$0xff]  ;;  %v215_v61 = vmax.f32 %v1696_v59, 0.0 }
  0xb9   :  { %955 = vst [vmem:[#allocation1 + $0x7] ss:$9 sm:$0xff] %v766_v28  ;;  %v339_v14 = vadd.f32 1.0, %v1446_v2  ;;  %v241_v25 = vand.u32 2147483647, %v1709_v22 }
  0xba   :  { %v413_v18 = vadd.f32 %v370_v6, %v213_v50  ;;  %v302_v50 = vmul.f32 1.442695, %v267_v60 }
  0xbb   :  { %1447 = vlog2.f32 %v339_v14  ;;  %v266_v38 = vsub.f32 0.0, %v241_v25 }
  0xbc   :  { %v641_v21 = vsub.f32 %v413_v18, %v616_v19  ;;  %1449 = vpow2.f32 %v298_v20 }
  0xbd   :  { %v300_v46 = vmul.f32 1.442695, %v266_v38 }
  0xbe   :  { %v781_v27 = vrot.slane %v641_v21, 1  ;;  %v782_v28 = vrot.slane %v641_v21, 2  ;;  %v783_v31 = vrot.slane %v641_v21, 3  ;;  %v785_v13 = vrot.slane %v641_v21, 5 }
  0xbf   :  { %v787_v41 = vrot.slane %v641_v21, 7 }
  0xc0   :  { %v956_v11 = vld [vmem:[#allocation1] sm:$0xff] }
  0xc1   :  { %957 = vst [vmem:[#allocation1] ss:$9 sm:$0xff] %v639_v34  ;;  %1156 = vperm.xlu0 %1416, %v956_v11   ;;  %v1448_v26 = vpop.eup %1447  ;;  %v784_v34 = vrot.slane %v641_v21, 4  ;;  %v676_v11 = vsel %vm660_vm0, %v190_v37, 0.0  ;;  %v1747_v37 = vld [vmem:[%s2001_s0 + $0x60] sm:$0xff] }
  0xc2   :  { %958 = vst [vmem:[#allocation1 + $0x1] ss:$9 sm:$0xff] %v767_v39  ;;  %v1450_v23 = vpop.eup %1449  ;;  %v372_v36 = vmul.f32 0.6931472, %v1448_v26  ;;  %v786_v39 = vrot.slane %v641_v21, 6  ;;  %v677_v44 = vadd.f32 %v676_v11, %v675_v17 }
  0xc3   :  { %959 = vst [vmem:[#allocation1 + $0x2] ss:$9 sm:$0xff] %v768_v40  ;;  %v340_v40 = vadd.f32 1.0, %v1450_v23 }
  0xc4   :  { %960 = vst [vmem:[#allocation1 + $0x3] ss:$9 sm:$0xff] %v769_v32  ;;  %v414_v45 = vadd.f32 %v372_v36, %v214_v35  ;;  %v617_v32 = vmul.f32 %v482_v43, %v1683_v33  ;;  %v140_v33 = vld [vmem:[%s2002_s1 + $0x48] sm:$0xff]  ;;  %v142_v43 = vld [vmem:[%s2002_s1 + $0x58] sm:$0xff] }
  0xc5   :  { %961 = vst [vmem:[#allocation1 + $0x4] ss:$9 sm:$0xff] %v770_v47  ;;  %1451 = vlog2.f32 %v340_v40  ;;  %v166_v54 = vsub.f32 %v1709_v22, %v140_v33 }
  0xc6   :  { %962 = vst [vmem:[#allocation1 + $0x5] ss:$9 sm:$0xff] %v771_v51  ;;  %v642_v47 = vsub.f32 %v414_v45, %v617_v32  ;;  %1453 = vpow2.f32 %v300_v46  ;;  %v217_v45 = vmax.f32 %v1722_v48, 0.0 }
  0xc7   :  { %963 = vst [vmem:[#allocation1 + $0x6] ss:$9 sm:$0xff] %v772_v53  ;;  %v191_v1 = vmul.f32 %v166_v54, %v166_v54 }
  0xc8   :  { %964 = vst [vmem:[#allocation1 + $0x7] ss:$9 sm:$0xff] %v773_v56  ;;  %v788_v52 = vrot.slane %v642_v47, 1  ;;  %v789_v53 = vrot.slane %v642_v47, 2  ;;  %v790_v56 = vrot.slane %v642_v47, 3  ;;  %v792_v42 = vrot.slane %v642_v47, 5 }
  0xc9   :  { %v793_v2 = vrot.slane %v642_v47, 6 }
  0xcb   :  { %v1452_v51 = vpop.eup %1451 }
  0xcc   :  { %v1454_v24 = vpop.eup %1453 }
  0xcf   :  { %v965_v3 = vld [vmem:[#allocation1] sm:$0xff] }
  0xd0   :  { %966 = vst [vmem:[#allocation1] ss:$9 sm:$0xff] %v640_v57  ;;  %1159 = vperm.xlu1 %1415, %v965_v3   ;;  %v791_v57 = vrot.slane %v642_v47, 4  ;;  %v341_v3 = vadd.f32 1.0, %v1454_v24 }
  0xd1   :  { %967 = vst [vmem:[#allocation1 + $0x1] ss:$9 sm:$0xff] %v774_v62  ;;  %v374_v62 = vmul.f32 0.6931472, %v1452_v51 }
  0xd2   :  { %968 = vst [vmem:[#allocation1 + $0x2] ss:$9 sm:$0xff] %v775_v63  ;;  %v488_v63 = vpop.permute.xlu0 %487  ;;  %1455 = vlog2.f32 %v341_v3 }
  0xd3   :  { %969 = vst [vmem:[#allocation1 + $0x3] ss:$9 sm:$0xff] %v776_v58  ;;  %v794_v58 = vrot.slane %v642_v47, 7  ;;  %v415_v6 = vadd.f32 %v374_v62, %v215_v61  ;;  %v618_v8 = vmul.f32 %v488_v63, %v1696_v59  ;;  %1457 = vpow2.f32 %v302_v50  ;;  %v141_v59 = vld [vmem:[%s2002_s1 + $0x50] sm:$0xff] }
  0xd4   :  { %970 = vst [vmem:[#allocation1 + $0x4] ss:$9 sm:$0xff] %v777_v5  ;;  %v678_v5 = vsel %vm660_vm0, %v191_v1, 0.0  ;;  %v1763_v1 = vld [vmem:[%s2001_s0 + $0x68] sm:$0xff] }
  0xd5   :  { %971 = vst [vmem:[#allocation1 + $0x5] ss:$9 sm:$0xff] %v778_v12  ;;  %v679_v9 = vadd.f32 %v678_v5, %v677_v44  ;;  %v643_v12 = vsub.f32 %v415_v6, %v618_v8 }
  0xd6   :  { %972 = vst [vmem:[#allocation1 + $0x6] ss:$9 sm:$0xff] %v779_v10  ;;  %v243_v10 = vand.u32 2147483647, %v1735_v7 }
  0xd7   :  { %973 = vst [vmem:[#allocation1 + $0x7] ss:$9 sm:$0xff] %v780_v16  ;;  %v795_v15 = vrot.slane %v643_v12, 1  ;;  %v796_v16 = vrot.slane %v643_v12, 2  ;;  %v797_v19 = vrot.slane %v643_v12, 3  ;;  %v798_v20 = vrot.slane %v643_v12, 4 }
  0xd8   :  { %v1456_v14 = vpop.eup %1455  ;;  %v268_v26 = vsub.f32 0.0, %v243_v10  ;;  %v799_v4 = vrot.slane %v643_v12, 5  ;;  %v800_v23 = vrot.slane %v643_v12, 6 }
  0xd9   :  { %v1458_v17 = vpop.eup %1457  ;;  %v376_v25 = vmul.f32 0.6931472, %v1456_v14 }
  0xda   :  { %v342_v29 = vadd.f32 1.0, %v1458_v17  ;;  %v304_v35 = vmul.f32 1.442695, %v268_v26 }
  0xdc   :  { %1459 = vlog2.f32 %v342_v29 }
  0xdd   :  { %1461 = vpow2.f32 %v304_v35 }
  0xde   :  { %v974_v30 = vld [vmem:[#allocation1] sm:$0xff] }
  0xdf   :  { %975 = vst [vmem:[#allocation1] ss:$9 sm:$0xff] %v641_v21  ;;  %1162 = vperm.xlu2 %1414, %v974_v30   ;;  %v216_v21 = vmax.f32 %v1709_v22, 0.0  ;;  %v801_v30 = vrot.slane %v643_v12, 7 }
  0xe0   :  { %976 = vst [vmem:[#allocation1 + $0x1] ss:$9 sm:$0xff] %v781_v27  ;;  %v167_v27 = vsub.f32 %v1722_v48, %v141_v59 }
  0xe1   :  { %977 = vst [vmem:[#allocation1 + $0x2] ss:$9 sm:$0xff] %v782_v28  ;;  %v494_v28 = vpop.permute.xlu1 %493 }
  0xe2   :  { %978 = vst [vmem:[#allocation1 + $0x3] ss:$9 sm:$0xff] %v783_v31  ;;  %v416_v31 = vadd.f32 %v376_v25, %v216_v21  ;;  %v192_v36 = vmul.f32 %v167_v27, %v167_v27  ;;  %v1460_v40 = vpop.eup %1459  ;;  %v1775_v27 = vld [vmem:[%s2001_s0 + $0x70] sm:$0xff] }
  0xe3   :  { %979 = vst [vmem:[#allocation1 + $0x4] ss:$9 sm:$0xff] %v784_v34  ;;  %v619_v34 = vmul.f32 %v494_v28, %v1709_v22  ;;  %v1462_v44 = vpop.eup %1461  ;;  %v246_v28 = vand.u32 2147483647, %v1775_v27 }
  0xe4   :  { %980 = vst [vmem:[#allocation1 + $0x5] ss:$9 sm:$0xff] %v785_v13  ;;  %v680_v13 = vsel %vm660_vm0, %v192_v36, 0.0  ;;  %v343_v24 = vadd.f32 1.0, %v1462_v44 }
  0xe5   :  { %981 = vst [vmem:[#allocation1 + $0x6] ss:$9 sm:$0xff] %v786_v39  ;;  %v644_v38 = vsub.f32 %v416_v31, %v619_v34  ;;  %v244_v39 = vand.u32 2147483647, %v1747_v37  ;;  %v681_v22 = vadd.f32 %v680_v13, %v679_v9  ;;  %v218_v9 = vmax.f32 %v1735_v7, 0.0 }
  0xe6   :  { %982 = vst [vmem:[#allocation1 + $0x7] ss:$9 sm:$0xff] %v787_v41  ;;  %1463 = vlog2.f32 %v343_v24  ;;  %v219_v31 = vmax.f32 %v1747_v37, 0.0 }
  0xe7   :  { %v802_v11 = vrot.slane %v644_v38, 1  ;;  %v803_v41 = vrot.slane %v644_v38, 2  ;;  %v804_v46 = vrot.slane %v644_v38, 3  ;;  %v269_v49 = vsub.f32 0.0, %v244_v39 }
  0xe8   :  { %v805_v51 = vrot.slane %v644_v38, 4  ;;  %v806_v33 = vrot.slane %v644_v38, 5 }
  0xe9   :  { %v306_v61 = vmul.f32 1.442695, %v269_v49 }
  0xeb   :  { %1465 = vpow2.f32 %v306_v61 }
  0xed   :  { %v983_v55 = vld [vmem:[#allocation1] sm:$0xff] }
  0xee   :  { %984 = vst [vmem:[#allocation1] ss:$9 sm:$0xff] %v642_v47  ;;  %1165 = vperm.xlu1 %1415, %v983_v55   ;;  %v378_v47 = vmul.f32 0.6931472, %v1460_v40  ;;  %v500_v55 = vpop.permute.xlu2 %499  ;;  %v271_v40 = vsub.f32 0.0, %v246_v28  ;;  %v221_v28 = vmax.f32 %v1775_v27, 0.0 }
  0xef   :  { %985 = vst [vmem:[#allocation1 + $0x1] ss:$9 sm:$0xff] %v788_v52  ;;  %v168_v52 = vsub.f32 %v1735_v7, %v142_v43  ;;  %v620_v60 = vmul.f32 %v500_v55, %v1722_v48  ;;  %v1464_v48 = vpop.eup %1463 }
  0xf0   :  { %986 = vst [vmem:[#allocation1 + $0x2] ss:$9 sm:$0xff] %v789_v53  ;;  %v807_v53 = vrot.slane %v644_v38, 6 }
  0xf1   :  { %987 = vst [vmem:[#allocation1 + $0x3] ss:$9 sm:$0xff] %v790_v56  ;;  %v193_v54 = vmul.f32 %v168_v52, %v168_v52  ;;  %v808_v56 = vrot.slane %v644_v38, 7  ;;  %v1466_v5 = vpop.eup %1465 }
  0xf2   :  { %988 = vst [vmem:[#allocation1 + $0x4] ss:$9 sm:$0xff] %v791_v57  ;;  %v417_v57 = vadd.f32 %v378_v47, %v217_v45 }
  0xf3   :  { %989 = vst [vmem:[#allocation1 + $0x5] ss:$9 sm:$0xff] %v792_v42  ;;  %v682_v62 = vsel %vm660_vm0, %v193_v54, 0.0  ;;  %v1790_v54 = vld [vmem:[%s2001_s0 + $0x78] sm:$0xff] }
  0xf4   :  { %990 = vst [vmem:[#allocation1 + $0x6] ss:$9 sm:$0xff] %v793_v2  ;;  %v1758_v42 = vadd.f32 %v682_v62, %v681_v22  ;;  %v645_v63 = vsub.f32 %v417_v57, %v620_v60  ;;  %v245_v2 = vand.u32 2147483647, %v1763_v1  ;;  %v247_v24 = vand.u32 2147483647, %v1790_v54 }
  0xf5   :  { %991 = vst [vmem:[#allocation1 + $0x7] ss:$9 sm:$0xff] %v794_v58 }
  0xf6   :  { %v809_v3 = vrot.slane %v645_v63, 1  ;;  %v810_v58 = vrot.slane %v645_v63, 2  ;;  %v811_v50 = vrot.slane %v645_v63, 3  ;;  %v812_v6 = vrot.slane %v645_v63, 4  ;;  %v512_v45 = vpop.permute.xlu2 %511 }
  0xf7   :  { %v270_v10 = vsub.f32 0.0, %v245_v2  ;;  %v813_v14 = vrot.slane %v645_v63, 5  ;;  %v814_v59 = vrot.slane %v645_v63, 6  ;;  %v815_v17 = vrot.slane %v645_v63, 7 }
  0xf8   :  { %v622_v49 = vmul.f32 %v512_v45, %v1747_v37  ;;  %v272_v2 = vsub.f32 0.0, %v247_v24 }
  0xf9   :  { %v308_v21 = vmul.f32 1.442695, %v270_v10 }
  0xfc   :  { %v992_v18 = vld [vmem:[#allocation1] sm:$0xff] }
  0xfd   :  { %993 = vst [vmem:[#allocation1] ss:$9 sm:$0xff] %v643_v12  ;;  %1168 = vperm.xlu1 %1415, %v992_v18   ;;  %v380_v12 = vmul.f32 0.6931472, %v1464_v48  ;;  %v143_v18 = vld [vmem:[%s2002_s1 + $0x60] sm:$0xff]  ;;  %v220_v48 = vmax.f32 %v1763_v1, 0.0 }
  0xfe   :  { %994 = vst [vmem:[#allocation1 + $0x1] ss:$9 sm:$0xff] %v795_v15  ;;  %v506_v15 = vpop.permute.xlu1 %505  ;;  %v169_v25 = vsub.f32 %v1747_v37, %v143_v18 }
  0xff   :  { %995 = vst [vmem:[#allocation1 + $0x2] ss:$9 sm:$0xff] %v796_v16  ;;  %v344_v16 = vadd.f32 1.0, %v1466_v5 }
 0x100   :  { %996 = vst [vmem:[#allocation1 + $0x3] ss:$9 sm:$0xff] %v797_v19  ;;  %v418_v19 = vadd.f32 %v380_v12, %v218_v9 }
 0x101   :  { %997 = vst [vmem:[#allocation1 + $0x4] ss:$9 sm:$0xff] %v798_v20  ;;  %v621_v20 = vmul.f32 %v506_v15, %v1735_v7  ;;  %1467 = vlog2.f32 %v344_v16 }
 0x102   :  { %998 = vst [vmem:[#allocation1 + $0x5] ss:$9 sm:$0xff] %v799_v4  ;;  %1469 = vpow2.f32 %v308_v21  ;;  %v194_v4 = vmul.f32 %v169_v25, %v169_v25  ;;  %v146_v21 = vld [vmem:[%s2002_s1 + $0x78] sm:$0xff] }
 0x103   :  { %999 = vst [vmem:[#allocation1 + $0x6] ss:$9 sm:$0xff] %v800_v23  ;;  %v646_v26 = vsub.f32 %v418_v19, %v621_v20 }
 0x104   :  { %1000 = vst [vmem:[#allocation1 + $0x7] ss:$9 sm:$0xff] %v801_v30  ;;  %v684_v34 = vsel %vm660_vm0, %v194_v4, 0.0 }
 0x105   :  { %v816_v23 = vrot.slane %v646_v26, 1  ;;  %v817_v7 = vrot.slane %v646_v26, 2  ;;  %v818_v36 = vrot.slane %v646_v26, 3  ;;  %v819_v39 = vrot.slane %v646_v26, 4 }
 0x106   :  { %v685_v44 = vadd.f32 %v684_v34, %v1758_v42 }
 0x107   :  { %v1468_v29 = vpop.eup %1467 }
 0x108   :  { %v1470_v30 = vpop.eup %1469  ;;  %v382_v13 = vmul.f32 0.6931472, %v1468_v29 }
 0x109   :  { %v345_v43 = vadd.f32 1.0, %v1470_v30  ;;  %v172_v30 = vsub.f32 %v1790_v54, %v146_v21 }
 0x10a   :  { %v419_v47 = vadd.f32 %v382_v13, %v219_v31 }
 0x10b   :  { %v1001_v32 = vld [vmem:[#allocation1] sm:$0xff]  ;;  %1471 = vlog2.f32 %v345_v43 }
 0x10c   :  { %1002 = vst [vmem:[#allocation1] ss:$9 sm:$0xff] %v644_v38  ;;  %1171 = vperm.xlu0 %1416, %v1001_v32   ;;  %v144_v38 = vld [vmem:[%s2002_s1 + $0x68] sm:$0xff]  ;;  %v822_v32 = vrot.slane %v646_v26, 7 }
 0x10d   :  { %1003 = vst [vmem:[#allocation1 + $0x1] ss:$9 sm:$0xff] %v802_v11  ;;  %v820_v11 = vrot.slane %v646_v26, 5  ;;  %v170_v22 = vsub.f32 %v1763_v1, %v144_v38  ;;  %v524_v38 = vpop.permute.xlu1 %523 }
 0x10e   :  { %1004 = vst [vmem:[#allocation1 + $0x2] ss:$9 sm:$0xff] %v803_v41  ;;  %v821_v41 = vrot.slane %v646_v26, 6 }
 0x10f   :  { %1005 = vst [vmem:[#allocation1 + $0x3] ss:$9 sm:$0xff] %v804_v46  ;;  %v195_v46 = vmul.f32 %v170_v22, %v170_v22  ;;  %v1815_v22 = vld [vmem:[%s2001_s0 + $0x88] sm:$0xff] }
 0x110   :  { %1006 = vst [vmem:[#allocation1 + $0x4] ss:$9 sm:$0xff] %v805_v51  ;;  %v310_v51 = vmul.f32 1.442695, %v271_v40 }
 0x111   :  { %1007 = vst [vmem:[#allocation1 + $0x5] ss:$9 sm:$0xff] %v806_v33  ;;  %v686_v52 = vsel %vm660_vm0, %v195_v46, 0.0  ;;  %v1472_v55 = vpop.eup %1471 }
 0x112   :  { %1008 = vst [vmem:[#allocation1 + $0x6] ss:$9 sm:$0xff] %v807_v53  ;;  %v687_v33 = vadd.f32 %v686_v52, %v685_v44  ;;  %v647_v53 = vsub.f32 %v419_v47, %v622_v49  ;;  %1473 = vpow2.f32 %v310_v51  ;;  %v249_v44 = vand.u32 2147483647, %v1815_v22 }
 0x113   :  { %1009 = vst [vmem:[#allocation1 + $0x7] ss:$9 sm:$0xff] %v808_v56  ;;  %v145_v56 = vld [vmem:[%s2002_s1 + $0x70] sm:$0xff]  ;;  %v222_v49 = vmax.f32 %v1790_v54, 0.0 }
 0x114   :  { %v823_v37 = vrot.slane %v647_v53, 1  ;;  %v824_v57 = vrot.slane %v647_v53, 2  ;;  %v171_v60 = vsub.f32 %v1775_v27, %v145_v56  ;;  %v825_v62 = vrot.slane %v647_v53, 3 }
 0x115   :  { %v826_v42 = vrot.slane %v647_v53, 4  ;;  %v827_v5 = vrot.slane %v647_v53, 5  ;;  %v829_v12 = vrot.slane %v647_v53, 7 }
 0x118   :  { %v1474_v61 = vpop.eup %1473 }
 0x11a   :  { %v1010_v8 = vld [vmem:[#allocation1] sm:$0xff] }
 0x11b   :  { %1011 = vst [vmem:[#allocation1] ss:$9 sm:$0xff] %v645_v63  ;;  %1174 = vperm.xlu2 %1414, %v1010_v8   ;;  %v346_v8 = vadd.f32 1.0, %v1474_v61 }
 0x11c   :  { %1012 = vst [vmem:[#allocation1 + $0x1] ss:$9 sm:$0xff] %v809_v3  ;;  %v384_v3 = vmul.f32 0.6931472, %v1472_v55 }
 0x11d   :  { %1013 = vst [vmem:[#allocation1 + $0x2] ss:$9 sm:$0xff] %v810_v58  ;;  %v196_v58 = vmul.f32 %v171_v60, %v171_v60  ;;  %1475 = vlog2.f32 %v346_v8 }
 0x11e   :  { %1014 = vst [vmem:[#allocation1 + $0x3] ss:$9 sm:$0xff] %v811_v50  ;;  %v518_v50 = vpop.permute.xlu0 %517  ;;  %v420_v15 = vadd.f32 %v384_v3, %v220_v48 }
 0x11f   :  { %1015 = vst [vmem:[#allocation1 + $0x4] ss:$9 sm:$0xff] %v812_v6  ;;  %v828_v6 = vrot.slane %v647_v53, 6  ;;  %v688_v9 = vsel %vm660_vm0, %v196_v58, 0.0 }
 0x120   :  { %1016 = vst [vmem:[#allocation1 + $0x5] ss:$9 sm:$0xff] %v813_v14  ;;  %v689_v10 = vadd.f32 %v688_v9, %v687_v33  ;;  %v312_v14 = vmul.f32 1.442695, %v272_v2  ;;  %v1826_v2 = vld [vmem:[%s2001_s0 + $0x90] sm:$0xff] }
 0x121   :  { %1017 = vst [vmem:[#allocation1 + $0x6] ss:$9 sm:$0xff] %v814_v59  ;;  %v623_v59 = vmul.f32 %v518_v50, %v1763_v1  ;;  %v250_v48 = vand.u32 2147483647, %v1826_v2 }
 0x122   :  { %1018 = vst [vmem:[#allocation1 + $0x7] ss:$9 sm:$0xff] %v815_v17  ;;  %1477 = vpow2.f32 %v312_v14  ;;  %v1803_v17 = vld [vmem:[%s2001_s0 + $0x80] sm:$0xff] }
 0x123   :  { %v648_v16 = vsub.f32 %v420_v15, %v623_v59  ;;  %v248_v18 = vand.u32 2147483647, %v1803_v17  ;;  %v1476_v19 = vpop.eup %1475  ;;  %v223_v9 = vmax.f32 %v1803_v17, 0.0 }
 0x125   :  { %v830_v20 = vrot.slane %v648_v16, 1  ;;  %v831_v1 = vrot.slane %v648_v16, 2  ;;  %v832_v4 = vrot.slane %v648_v16, 3  ;;  %v833_v29 = vrot.slane %v648_v16, 4 }
 0x126   :  { %v834_v31 = vrot.slane %v648_v16, 5 }
 0x128   :  { %v1478_v25 = vpop.eup %1477 }
 0x129   :  { %v1019_v35 = vld [vmem:[#allocation1] sm:$0xff]  ;;  %v347_v34 = vadd.f32 1.0, %v1478_v25  ;;  %v1836_v25 = vld [vmem:[%s2001_s0 + $0x98] sm:$0xff] }
 0x12a   :  { %1020 = vst [vmem:[#allocation1] ss:$9 sm:$0xff] %v646_v26  ;;  %1177 = vperm.xlu1 %1415, %v1019_v35   ;;  %v835_v35 = vrot.slane %v648_v16, 6 }
 0x12b   :  { %1021 = vst [vmem:[#allocation1 + $0x1] ss:$9 sm:$0xff] %v816_v23  ;;  %v386_v23 = vmul.f32 0.6931472, %v1476_v19  ;;  %1479 = vlog2.f32 %v347_v34 }
 0x12c   :  { %1022 = vst [vmem:[#allocation1 + $0x2] ss:$9 sm:$0xff] %v817_v7  ;;  %v273_v7 = vsub.f32 0.0, %v248_v18  ;;  %v536_v18 = vpop.permute.xlu1 %535 }
 0x12d   :  { %1023 = vst [vmem:[#allocation1 + $0x3] ss:$9 sm:$0xff] %v818_v36  ;;  %v836_v36 = vrot.slane %v648_v16, 7  ;;  %v421_v13 = vadd.f32 %v386_v23, %v221_v28 }
 0x12e   :  { %1024 = vst [vmem:[#allocation1 + $0x4] ss:$9 sm:$0xff] %v819_v39  ;;  %v624_v39 = vmul.f32 %v524_v38, %v1775_v27  ;;  %v314_v40 = vmul.f32 1.442695, %v273_v7  ;;  %v224_v7 = vmax.f32 %v1815_v22, 0.0  ;;  %v147_v38 = vld [vmem:[%s2002_s1 + $0x80] sm:$0xff] }
 0x12f   :  { %1025 = vst [vmem:[#allocation1 + $0x5] ss:$9 sm:$0xff] %v820_v11  ;;  %v197_v11 = vmul.f32 %v172_v30, %v172_v30 }
 0x130   :  { %1026 = vst [vmem:[#allocation1 + $0x6] ss:$9 sm:$0xff] %v821_v41  ;;  %v649_v41 = vsub.f32 %v421_v13, %v624_v39  ;;  %1481 = vpow2.f32 %v314_v40 }
 0x131   :  { %1027 = vst [vmem:[#allocation1 + $0x7] ss:$9 sm:$0xff] %v822_v32  ;;  %v690_v43 = vsel %vm660_vm0, %v197_v11, 0.0  ;;  %v1480_v45 = vpop.eup %1479 }
 0x132   :  { %v837_v32 = vrot.slane %v649_v41, 1  ;;  %v1819_v27 = vadd.f32 %v690_v43, %v689_v10  ;;  %v838_v46 = vrot.slane %v649_v41, 2  ;;  %v839_v52 = vrot.slane %v649_v41, 3 }
 0x133   :  { %v388_v33 = vmul.f32 0.6931472, %v1480_v45  ;;  %v840_v24 = vrot.slane %v649_v41, 4  ;;  %v841_v55 = vrot.slane %v649_v41, 5  ;;  %v843_v60 = vrot.slane %v649_v41, 7 }
 0x134   :  { %v275_v10 = vsub.f32 0.0, %v250_v48  ;;  %v173_v45 = vsub.f32 %v1803_v17, %v147_v38 }
 0x135   :  { %v422_v61 = vadd.f32 %v388_v33, %v222_v49 }
 0x136   :  { %v1482_v47 = vpop.eup %1481  ;;  %v318_v21 = vmul.f32 1.442695, %v275_v10 }
 0x137   :  { %v348_v56 = vadd.f32 1.0, %v1482_v47 }
 0x138   :  { %v1028_v63 = vld [vmem:[#allocation1] sm:$0xff] }
 0x139   :  { %1029 = vst [vmem:[#allocation1] ss:$9 sm:$0xff] %v647_v53  ;;  %1180 = vperm.xlu0 %1416, %v1028_v63   ;;  %v274_v53 = vsub.f32 0.0, %v249_v44  ;;  %1483 = vlog2.f32 %v348_v56 }
 0x13a   :  { %1030 = vst [vmem:[#allocation1 + $0x1] ss:$9 sm:$0xff] %v823_v37  ;;  %v842_v37 = vrot.slane %v649_v41, 6 }
 0x13b   :  { %1031 = vst [vmem:[#allocation1 + $0x2] ss:$9 sm:$0xff] %v824_v57  ;;  %v530_v57 = vpop.permute.xlu2 %529 }
 0x13c   :  { %1032 = vst [vmem:[#allocation1 + $0x3] ss:$9 sm:$0xff] %v825_v62  ;;  %v625_v62 = vmul.f32 %v530_v57, %v1790_v54  ;;  %v150_v57 = vld [vmem:[%s2002_s1 + $0x98] sm:$0xff] }
 0x13d   :  { %1033 = vst [vmem:[#allocation1 + $0x4] ss:$9 sm:$0xff] %v826_v42  ;;  %v316_v42 = vmul.f32 1.442695, %v274_v53 }
 0x13e   :  { %1034 = vst [vmem:[#allocation1 + $0x5] ss:$9 sm:$0xff] %v827_v5  ;;  %v650_v63 = vsub.f32 %v422_v61, %v625_v62 }
 0x13f   :  { %1035 = vst [vmem:[#allocation1 + $0x6] ss:$9 sm:$0xff] %v828_v6  ;;  %1485 = vpow2.f32 %v316_v42  ;;  %v1484_v3 = vpop.eup %1483 }
 0x140   :  { %1036 = vst [vmem:[#allocation1 + $0x7] ss:$9 sm:$0xff] %v829_v12  ;;  %v844_v58 = vrot.slane %v650_v63, 1  ;;  %v845_v5 = vrot.slane %v650_v63, 2  ;;  %v846_v54 = vrot.slane %v650_v63, 3  ;;  %v847_v6 = vrot.slane %v650_v63, 4 }
 0x141   :  { %v390_v12 = vmul.f32 0.6931472, %v1484_v3  ;;  %v848_v14 = vrot.slane %v650_v63, 5  ;;  %v849_v15 = vrot.slane %v650_v63, 6  ;;  %v225_v3 = vmax.f32 %v1826_v2, 0.0 }
 0x143   :  { %v423_v19 = vadd.f32 %v390_v12, %v223_v9  ;;  %v542_v11 = vpop.permute.xlu2 %541  ;;  %v151_v12 = vld [vmem:[%s2002_s1 + $0xa0] sm:$0xff] }
 0x144   :  { %v627_v44 = vmul.f32 %v542_v11, %v1815_v22 }
 0x145   :  { %v1486_v50 = vpop.eup %1485 }
 0x146   :  { %v349_v59 = vadd.f32 1.0, %v1486_v50 }
 0x147   :  { %v1037_v26 = vld [vmem:[#allocation1] sm:$0xff] }
 0x148   :  { %1038 = vst [vmem:[#allocation1] ss:$9 sm:$0xff] %v648_v16  ;;  %1183 = vperm.xlu2 %1414, %v1037_v26   ;;  %v850_v16 = vrot.slane %v650_v63, 7  ;;  %1487 = vlog2.f32 %v349_v59  ;;  %v251_v26 = vand.u32 2147483647, %v1836_v25 }
 0x149   :  { %1039 = vst [vmem:[#allocation1 + $0x1] ss:$9 sm:$0xff] %v830_v20  ;;  %v626_v20 = vmul.f32 %v536_v18, %v1803_v17  ;;  %1489 = vpow2.f32 %v318_v21  ;;  %v149_v17 = vld [vmem:[%s2002_s1 + $0x90] sm:$0xff] }
 0x14a   :  { %1040 = vst [vmem:[#allocation1 + $0x2] ss:$9 sm:$0xff] %v831_v1 }
 0x14b   :  { %1041 = vst [vmem:[#allocation1 + $0x3] ss:$9 sm:$0xff] %v832_v4  ;;  %v651_v1 = vsub.f32 %v423_v19, %v626_v20 }
 0x14c   :  { %1042 = vst [vmem:[#allocation1 + $0x4] ss:$9 sm:$0xff] %v833_v29 }
 0x14d   :  { %1043 = vst [vmem:[#allocation1 + $0x5] ss:$9 sm:$0xff] %v834_v31  ;;  %v851_v28 = vrot.slane %v651_v1, 1  ;;  %v852_v29 = vrot.slane %v651_v1, 2  ;;  %v853_v31 = vrot.slane %v651_v1, 3  ;;  %v855_v13 = vrot.slane %v651_v1, 5 }
 0x14e   :  { %1044 = vst [vmem:[#allocation1 + $0x6] ss:$9 sm:$0xff] %v835_v35  ;;  %v1488_v4 = vpop.eup %1487  ;;  %v854_v35 = vrot.slane %v651_v1, 4  ;;  %v856_v39 = vrot.slane %v651_v1, 6 }
 0x14f   :  { %1045 = vst [vmem:[#allocation1 + $0x7] ss:$9 sm:$0xff] %v836_v36  ;;  %v1490_v23 = vpop.eup %1489  ;;  %v392_v34 = vmul.f32 0.6931472, %v1488_v4  ;;  %v276_v36 = vsub.f32 0.0, %v251_v26  ;;  %v1881_v26 = vld [vmem:[%s2001_s0 + $0xa8] sm:$0xff] }
 0x150   :  { %v350_v40 = vadd.f32 1.0, %v1490_v23 }
 0x151   :  { %v424_v43 = vadd.f32 %v392_v34, %v224_v7  ;;  %v1892_v34 = vld [vmem:[%s2001_s0 + $0xb0] sm:$0xff] }
 0x152   :  { %1491 = vlog2.f32 %v350_v40 }
 0x153   :  { %v652_v49 = vsub.f32 %v424_v43, %v627_v44 }
 0x155   :  { %v859_v56 = vrot.slane %v652_v49, 2  ;;  %v860_v61 = vrot.slane %v652_v49, 3  ;;  %v861_v62 = vrot.slane %v652_v49, 4  ;;  %v862_v50 = vrot.slane %v652_v49, 5 }
 0x156   :  { %v1046_v51 = vld [vmem:[#allocation1] sm:$0xff]  ;;  %v863_v9 = vrot.slane %v652_v49, 6 }
 0x157   :  { %1047 = vst [vmem:[#allocation1] ss:$9 sm:$0xff] %v649_v41  ;;  %1186 = vperm.xlu1 %1415, %v1046_v51   ;;  %v857_v41 = vrot.slane %v651_v1, 7  ;;  %v1854_v51 = vld [vmem:[%s2001_s0 + $0xa0] sm:$0xff] }
 0x158   :  { %1048 = vst [vmem:[#allocation1 + $0x1] ss:$9 sm:$0xff] %v837_v32  ;;  %v320_v32 = vmul.f32 1.442695, %v276_v36  ;;  %v252_v33 = vand.u32 2147483647, %v1854_v51  ;;  %v1492_v53 = vpop.eup %1491  ;;  %v177_v19 = vsub.f32 %v1854_v51, %v151_v12 }
 0x159   :  { %1049 = vst [vmem:[#allocation1 + $0x2] ss:$9 sm:$0xff] %v838_v46  ;;  %v148_v46 = vld [vmem:[%s2002_s1 + $0x88] sm:$0xff] }
 0x15a   :  { %1050 = vst [vmem:[#allocation1 + $0x3] ss:$9 sm:$0xff] %v839_v52  ;;  %v174_v47 = vsub.f32 %v1815_v22, %v148_v46  ;;  %v198_v52 = vmul.f32 %v173_v45, %v173_v45  ;;  %1493 = vpow2.f32 %v320_v32  ;;  %v175_v22 = vsub.f32 %v1826_v2, %v149_v17 }
 0x15b   :  { %1051 = vst [vmem:[#allocation1 + $0x4] ss:$9 sm:$0xff] %v840_v24  ;;  %v226_v32 = vmax.f32 %v1836_v25, 0.0 }
 0x15c   :  { %1052 = vst [vmem:[#allocation1 + $0x5] ss:$9 sm:$0xff] %v841_v55  ;;  %v199_v24 = vmul.f32 %v174_v47, %v174_v47  ;;  %v858_v55 = vrot.slane %v652_v49, 1 }
 0x15d   :  { %1053 = vst [vmem:[#allocation1 + $0x6] ss:$9 sm:$0xff] %v842_v37  ;;  %v692_v37 = vsel %vm660_vm0, %v198_v52, 0.0 }
 0x15e   :  { %1054 = vst [vmem:[#allocation1 + $0x7] ss:$9 sm:$0xff] %v843_v60  ;;  %v693_v48 = vadd.f32 %v692_v37, %v1819_v27  ;;  %v864_v27 = vrot.slane %v652_v49, 7 }
 0x160   :  { %v1494_v60 = vpop.eup %1493 }
 0x161   :  { %v351_v10 = vadd.f32 1.0, %v1494_v60 }
 0x163   :  { %1495 = vlog2.f32 %v351_v10 }
 0x165   :  { %v1829_v8 = vld [vmem:[#allocation1] sm:$0xff] }
 0x166   :  { %1056 = vst [vmem:[#allocation1] ss:$9 sm:$0xff] %v650_v63  ;;  %v277_v63 = vsub.f32 0.0, %v252_v33 }
 0x167   :  { %1057 = vst [vmem:[#allocation1 + $0x1] ss:$9 sm:$0xff] %v844_v58  ;;  %v394_v58 = vmul.f32 0.6931472, %v1492_v53 }
 0x168   :  { %1058 = vst [vmem:[#allocation1 + $0x2] ss:$9 sm:$0xff] %v845_v5  ;;  %v694_v5 = vsel %vm660_vm0, %v199_v24, 0.0 }
 0x169   :  { %1059 = vst [vmem:[#allocation1 + $0x3] ss:$9 sm:$0xff] %v846_v54  ;;  %v176_v54 = vsub.f32 %v1836_v25, %v150_v57  ;;  %v425_v59 = vadd.f32 %v394_v58, %v225_v3 }
 0x16a   :  { %1060 = vst [vmem:[#allocation1 + $0x4] ss:$9 sm:$0xff] %v847_v6  ;;  %v200_v6 = vmul.f32 %v175_v22, %v175_v22 }
 0x16b   :  { %1061 = vst [vmem:[#allocation1 + $0x5] ss:$9 sm:$0xff] %v848_v14  ;;  %v548_v14 = vpop.permute.xlu0 %547  ;;  %v201_v20 = vmul.f32 %v176_v54, %v176_v54  ;;  %v1544_v54 = vmov 0.0  }
 0x16c   :  { %1062 = vst [vmem:[#allocation1 + $0x6] ss:$9 sm:$0xff] %v849_v15  ;;  %v322_v15 = vmul.f32 1.442695, %v277_v63  ;;  %v628_v18 = vmul.f32 %v548_v14, %v1826_v2  ;;  %v696_v21 = vsel %vm660_vm0, %v200_v6, 0.0 }
 0x16d   :  { %1063 = vst [vmem:[#allocation1 + $0x7] ss:$9 sm:$0xff] %v850_v16  ;;  %v695_v16 = vadd.f32 %v694_v5, %v693_v48  ;;  %v698_v23 = vsel %vm660_vm0, %v201_v20, 0.0  ;;  %v1915_v48 = vld [vmem:[%s2001_s0 + $0xb8] sm:$0xff] }
 0x16e   :  { %1497 = vpow2.f32 %v322_v15  ;;  %v653_v4 = vsub.f32 %v425_v59, %v628_v18  ;;  %100 = vst [vmem:[#allocation2] sm:$0xff] %v1544_v54  ;;  %v227_v18 = vmax.f32 %v1854_v51, 0.0 }
 0x16f   :  { %v697_v2 = vadd.f32 %v696_v21, %v695_v16  ;;  %105 = vst.msk [vmem:[#allocation3] sm:$0x3] %vm1949_vm1, %v1544_v54 }
 0x170   :  { %v866_v11 = vrot.slane %v653_v4, 2  ;;  %v867_v45 = vrot.slane %v653_v4, 3  ;;  %v868_v47 = vrot.slane %v653_v4, 4  ;;  %v869_v17 = vrot.slane %v653_v4, 5 }
 0x171   :  { %v699_v38 = vadd.f32 %v698_v23, %v697_v2  ;;  %v870_v24 = vrot.slane %v653_v4, 6  ;;  %v871_v37 = vrot.slane %v653_v4, 7 }
 0x174   :  { %v1840_v30 = vld [vmem:[#allocation1] sm:$0xff] }
 0x175   :  { %1065 = vst [vmem:[#allocation1] ss:$9 sm:$0xff] %v651_v1  ;;  %v152_v1 = vld [vmem:[%s2002_s1 + $0xa8] sm:$0xff] }
 0x176   :  { %1066 = vst [vmem:[#allocation1 + $0x1] ss:$9 sm:$0xff] %v851_v28  ;;  %v202_v28 = vmul.f32 %v177_v19, %v177_v19  ;;  %v178_v7 = vsub.f32 %v1881_v26, %v152_v1 }
 0x177   :  { %1067 = vst [vmem:[#allocation1 + $0x2] ss:$9 sm:$0xff] %v852_v29  ;;  %v153_v29 = vld [vmem:[%s2002_s1 + $0xb0] sm:$0xff] }
 0x178   :  { %1068 = vst [vmem:[#allocation1 + $0x3] ss:$9 sm:$0xff] %v853_v31  ;;  %v253_v31 = vand.u32 2147483647, %v1881_v26  ;;  %v179_v36 = vsub.f32 %v1892_v34, %v153_v29  ;;  %v203_v40 = vmul.f32 %v178_v7, %v178_v7  ;;  %v560_v7 = vpop.permute.xlu2 %559 }
 0x179   :  { %1069 = vst [vmem:[#allocation1 + $0x4] ss:$9 sm:$0xff] %v854_v35  ;;  %v1496_v35 = vpop.eup %1495 }
 0x17a   :  { %1070 = vst [vmem:[#allocation1 + $0x5] ss:$9 sm:$0xff] %v855_v13  ;;  %v865_v13 = vrot.slane %v653_v4, 1  ;;  %v278_v44 = vsub.f32 0.0, %v253_v31  ;;  %v396_v46 = vmul.f32 0.6931472, %v1496_v35 }
 0x17b   :  { %1071 = vst [vmem:[#allocation1 + $0x6] ss:$9 sm:$0xff] %v856_v39  ;;  %v700_v39 = vsel %vm660_vm0, %v202_v28, 0.0  ;;  %v702_v53 = vsel %vm660_vm0, %v203_v40, 0.0 }
 0x17c   :  { %1072 = vst [vmem:[#allocation1 + $0x7] ss:$9 sm:$0xff] %v857_v41  ;;  %v1498_v41 = vpop.eup %1497  ;;  %v701_v52 = vadd.f32 %v700_v39, %v699_v38  ;;  %v426_v22 = vadd.f32 %v396_v46, %v226_v32  ;;  %v324_v57 = vmul.f32 1.442695, %v278_v44  ;;  %v255_v39 = vand.u32 2147483647, %v1915_v48 }
 0x17d   :  { %v352_v33 = vadd.f32 1.0, %v1498_v41 }
 0x17e   :  { %v703_v63 = vadd.f32 %v702_v53, %v701_v52 }
 0x17f   :  { %1499 = vlog2.f32 %v352_v33 }
 0x180   :  { %1501 = vpow2.f32 %v324_v57 }
 0x183   :  { %v1073_v42 = vld [vmem:[#allocation1] sm:$0xff] }
 0x184   :  { %1074 = vst [vmem:[#allocation1] ss:$9 sm:$0xff] %v652_v49  ;;  %1195 = vperm.xlu2 %1414, %v1073_v42   ;;  %v204_v49 = vmul.f32 %v179_v36, %v179_v36  ;;  %v154_v42 = vld [vmem:[%s2002_s1 + $0xb8] sm:$0xff]  ;;  %v630_v36 = vmul.f32 %v560_v7, %v1854_v51  ;;  %v228_v51 = vmax.f32 %v1881_v26, 0.0 }
 0x185   :  { %1075 = vst [vmem:[#allocation1 + $0x1] ss:$9 sm:$0xff] %v858_v55  ;;  %v554_v55 = vpop.permute.xlu1 %553  ;;  %v180_v3 = vsub.f32 %v1915_v48, %v154_v42  ;;  %v1500_v10 = vpop.eup %1499 }
 0x186   :  { %1076 = vst [vmem:[#allocation1 + $0x2] ss:$9 sm:$0xff] %v859_v56  ;;  %v629_v56 = vmul.f32 %v554_v55, %v1836_v25  ;;  %v704_v60 = vsel %vm660_vm0, %v204_v49, 0.0  ;;  %v1502_v16 = vpop.eup %1501  ;;  %v398_v21 = vmul.f32 0.6931472, %v1500_v10 }
 0x187   :  { %1077 = vst [vmem:[#allocation1 + $0x3] ss:$9 sm:$0xff] %v860_v61  ;;  %v1903_v61 = vld [vmem:[%s2001_s0 + $0xc0] sm:$0xff]  ;;  %v205_v6 = vmul.f32 %v180_v3, %v180_v3  ;;  %v353_v23 = vadd.f32 1.0, %v1502_v16 }
 0x188   :  { %1078 = vst [vmem:[#allocation1 + $0x4] ss:$9 sm:$0xff] %v861_v62  ;;  %v155_v62 = vld [vmem:[%s2002_s1 + $0xc0] sm:$0xff]  ;;  %v654_v58 = vsub.f32 %v426_v22, %v629_v56  ;;  %v427_v35 = vadd.f32 %v398_v21, %v227_v18  ;;  %v256_v56 = vand.u32 2147483647, %v1903_v61 }
 0x189   :  { %1079 = vst [vmem:[#allocation1 + $0x5] ss:$9 sm:$0xff] %v862_v50  ;;  %v181_v25 = vsub.f32 %v1903_v61, %v155_v62  ;;  %v705_v50 = vadd.f32 %v704_v60, %v703_v63  ;;  %v706_v12 = vsel %vm660_vm0, %v205_v6, 0.0  ;;  %1503 = vlog2.f32 %v353_v23 }
 0x18a   :  { %1080 = vst [vmem:[#allocation1 + $0x6] ss:$9 sm:$0xff] %v863_v9  ;;  %v254_v9 = vand.u32 2147483647, %v1892_v34  ;;  %v873_v59 = vrot.slane %v654_v58, 2  ;;  %v874_v19 = vrot.slane %v654_v58, 3 }
 0x18b   :  { %1081 = vst [vmem:[#allocation1 + $0x7] ss:$9 sm:$0xff] %v864_v27  ;;  %v206_v5 = vmul.f32 %v181_v25, %v181_v25  ;;  %v872_v27 = vrot.slane %v654_v58, 1  ;;  %v707_v15 = vadd.f32 %v706_v12, %v705_v50  ;;  %v875_v2 = vrot.slane %v654_v58, 4  ;;  %v572_v12 = vpop.permute.xlu2 %571 }
 0x18c   :  { %v279_v1 = vsub.f32 0.0, %v254_v9  ;;  %v876_v28 = vrot.slane %v654_v58, 5  ;;  %v877_v29 = vrot.slane %v654_v58, 6  ;;  %v878_v31 = vrot.slane %v654_v58, 7 }
 0x18d   :  { %v708_v14 = vsel %vm660_vm0, %v206_v5, 0.0  ;;  %v566_v53 = vpop.permute.xlu1 %565  ;;  %v229_v63 = vmax.f32 %v1892_v34, 0.0  ;;  %v281_v5 = vsub.f32 0.0, %v256_v56 }
 0x18e   :  { %v326_v38 = vmul.f32 1.442695, %v279_v1  ;;  %v631_v55 = vmul.f32 %v566_v53, %v1881_v26 }
 0x18f   :  { %v1504_v40 = vpop.eup %1503 }
 0x190   :  { %1505 = vpow2.f32 %v326_v38  ;;  %v400_v46 = vmul.f32 0.6931472, %v1504_v40 }
 0x192   :  { %v1082_v43 = vld [vmem:[#allocation1] sm:$0xff] }
 0x193   :  { %1083 = vst [vmem:[#allocation1] ss:$9 sm:$0xff] %v653_v4  ;;  %1198 = vperm.xlu0 %1416, %v1082_v43   ;;  %v709_v4 = vadd.f32 %v708_v14, %v707_v15  ;;  %v632_v14 = vmul.f32 %v572_v12, %v1892_v34  ;;  %v330_v15 = vmul.f32 1.442695, %v281_v5 }
 0x194   :  { %1084 = vst [vmem:[#allocation1 + $0x1] ss:$9 sm:$0xff] %v865_v13  ;;  %v655_v13 = vsub.f32 %v427_v35, %v630_v36 }
 0x195   :  { %1085 = vst [vmem:[#allocation1 + $0x2] ss:$9 sm:$0xff] %v866_v11 }
 0x196   :  { %1086 = vst [vmem:[#allocation1 + $0x3] ss:$9 sm:$0xff] %v867_v45  ;;  %v879_v11 = vrot.slane %v655_v13, 1  ;;  %v880_v41 = vrot.slane %v655_v13, 2  ;;  %v1506_v43 = vpop.eup %1505  ;;  %v881_v44 = vrot.slane %v655_v13, 3  ;;  %v882_v45 = vrot.slane %v655_v13, 4 }
 0x197   :  { %1087 = vst [vmem:[#allocation1 + $0x4] ss:$9 sm:$0xff] %v868_v47  ;;  %v280_v47 = vsub.f32 0.0, %v255_v39  ;;  %v883_v49 = vrot.slane %v655_v13, 5  ;;  %v884_v52 = vrot.slane %v655_v13, 6  ;;  %v885_v33 = vrot.slane %v655_v13, 7 }
 0x198   :  { %1088 = vst [vmem:[#allocation1 + $0x5] ss:$9 sm:$0xff] %v869_v17  ;;  %v354_v17 = vadd.f32 1.0, %v1506_v43  ;;  %v231_v43 = vmax.f32 %v1903_v61, 0.0 }
 0x199   :  { %1089 = vst [vmem:[#allocation1 + $0x6] ss:$9 sm:$0xff] %v870_v24  ;;  %v428_v24 = vadd.f32 %v400_v46, %v228_v51  ;;  %v584_v51 = vpop.permute.xlu1 %583 }
 0x19a   :  { %1090 = vst [vmem:[#allocation1 + $0x7] ss:$9 sm:$0xff] %v871_v37  ;;  %v328_v37 = vmul.f32 1.442695, %v280_v47  ;;  %1507 = vlog2.f32 %v354_v17 }
 0x19b   :  { %712 = vst.msk [vmem:[#allocation2] sm:$0xff] %vm660_vm0, %v709_v4  ;;  %v656_v22 = vsub.f32 %v428_v24, %v631_v55  ;;  %v230_v4 = vmax.f32 %v1915_v48, 0.0  ;;  %vm1282_vm0 = vcmask 1048512  }
 0x19c   :  { %1509 = vpow2.f32 %v328_v37 }
 0x19d   :  { %v886_v60 = vrot.slane %v656_v22, 1  ;;  %v887_v62 = vrot.slane %v656_v22, 2  ;;  %v888_v25 = vrot.slane %v656_v22, 3  ;;  %v889_v26 = vrot.slane %v656_v22, 4 }
 0x19e   :  { %v890_v50 = vrot.slane %v656_v22, 5  ;;  %v891_v6 = vrot.slane %v656_v22, 6  ;;  %v892_v10 = vrot.slane %v656_v22, 7 }
 0x1a0   :  { %v1508_v57 = vpop.eup %1507 }
 0x1a1   :  { %v1091_v20 = vld [vmem:[#allocation1] sm:$0xff] }
 0x1a2   :  { %1092 = vst [vmem:[#allocation1] ss:$9 sm:$0xff] %v654_v58  ;;  %1201 = vperm.xlu2 %1414, %v1091_v20   ;;  %v1510_v42 = vpop.eup %1509  ;;  %v402_v58 = vmul.f32 0.6931472, %v1508_v57  ;;  %v1151_v57 = vpop.permute.xlu1 %1150  ;;  %v1314_v12 = vld [vmem:[#allocation2] sm:$0xff] }
 0x1a3   :  { %1093 = vst [vmem:[#allocation1 + $0x1] ss:$9 sm:$0xff] %v872_v27  ;;  %v355_v9 = vadd.f32 1.0, %v1510_v42 }
 0x1a4   :  { %1094 = vst [vmem:[#allocation1 + $0x2] ss:$9 sm:$0xff] %v873_v59  ;;  %v429_v27 = vadd.f32 %v402_v58, %v229_v63 }
 0x1a5   :  { %1095 = vst [vmem:[#allocation1 + $0x3] ss:$9 sm:$0xff] %v874_v19  ;;  %1511 = vlog2.f32 %v355_v9 }
 0x1a6   :  { %1096 = vst [vmem:[#allocation1 + $0x4] ss:$9 sm:$0xff] %v875_v2  ;;  %v657_v59 = vsub.f32 %v429_v27, %v632_v14  ;;  %1513 = vpow2.f32 %v330_v15 }
 0x1a7   :  { %1097 = vst [vmem:[#allocation1 + $0x5] ss:$9 sm:$0xff] %v876_v28 }
 0x1a8   :  { %1098 = vst [vmem:[#allocation1 + $0x6] ss:$9 sm:$0xff] %v877_v29  ;;  %v893_v18 = vrot.slane %v657_v59, 1  ;;  %v894_v19 = vrot.slane %v657_v59, 2  ;;  %v895_v21 = vrot.slane %v657_v59, 3  ;;  %v896_v2 = vrot.slane %v657_v59, 4 }
 0x1a9   :  { %1099 = vst [vmem:[#allocation1 + $0x7] ss:$9 sm:$0xff] %v878_v31  ;;  %v897_v34 = vrot.slane %v657_v59, 5  ;;  %v898_v29 = vrot.slane %v657_v59, 6  ;;  %v899_v7 = vrot.slane %v657_v59, 7  ;;  %v578_v31 = vpop.permute.xlu0 %577 }
 0x1aa   :  { %v633_v36 = vmul.f32 %v578_v31, %v1915_v48 }
 0x1ab   :  { %v1512_v16 = vpop.eup %1511 }
 0x1ac   :  { %v1514_v20 = vpop.eup %1513  ;;  %v404_v28 = vmul.f32 0.6931472, %v1512_v16 }
 0x1ad   :  { %v356_v23 = vadd.f32 1.0, %v1514_v20 }
 0x1ae   :  { %v430_v35 = vadd.f32 %v404_v28, %v230_v4 }
 0x1af   :  { %1515 = vlog2.f32 %v356_v23 }
 0x1b0   :  { %v1100_v32 = vld [vmem:[#allocation1] sm:$0xff]  ;;  %v658_v38 = vsub.f32 %v430_v35, %v633_v36 }
 0x1b1   :  { %1101 = vst [vmem:[#allocation1] ss:$9 sm:$0xff] %v655_v13  ;;  %1204 = vperm.xlu1 %1415, %v1100_v32  }
 0x1b2   :  { %1102 = vst [vmem:[#allocation1 + $0x1] ss:$9 sm:$0xff] %v879_v11  ;;  %v900_v39 = vrot.slane %v658_v38, 1  ;;  %v901_v40 = vrot.slane %v658_v38, 2  ;;  %v902_v11 = vrot.slane %v658_v38, 3  ;;  %v904_v32 = vrot.slane %v658_v38, 5 }
 0x1b3   :  { %1103 = vst [vmem:[#allocation1 + $0x2] ss:$9 sm:$0xff] %v880_v41  ;;  %v905_v48 = vrot.slane %v658_v38, 6  ;;  %v906_v46 = vrot.slane %v658_v38, 7 }
 0x1b4   :  { %1104 = vst [vmem:[#allocation1 + $0x3] ss:$9 sm:$0xff] %v881_v44 }
 0x1b5   :  { %1105 = vst [vmem:[#allocation1 + $0x4] ss:$9 sm:$0xff] %v882_v45  ;;  %v1516_v13 = vpop.eup %1515  ;;  %v903_v45 = vrot.slane %v658_v38, 4 }
 0x1b6   :  { %1106 = vst [vmem:[#allocation1 + $0x5] ss:$9 sm:$0xff] %v883_v49  ;;  %v406_v44 = vmul.f32 0.6931472, %v1516_v13  ;;  %v634_v49 = vmul.f32 %v584_v51, %v1903_v61  ;;  %v1148_v61 = vpop.permute.xlu2 %1147 }
 0x1b7   :  { %1107 = vst [vmem:[#allocation1 + $0x6] ss:$9 sm:$0xff] %v884_v52 }
 0x1b8   :  { %1108 = vst [vmem:[#allocation1 + $0x7] ss:$9 sm:$0xff] %v885_v33  ;;  %v431_v47 = vadd.f32 %v406_v44, %v231_v43 }
 0x1ba   :  { %v659_v52 = vsub.f32 %v431_v47, %v634_v49 }
 0x1bc   :  { %v907_v17 = vrot.slane %v659_v52, 1  ;;  %v908_v33 = vrot.slane %v659_v52, 2  ;;  %v909_v53 = vrot.slane %v659_v52, 3  ;;  %v910_v55 = vrot.slane %v659_v52, 4 }
 0x1bd   :  { %v911_v37 = vrot.slane %v659_v52, 5  ;;  %v913_v56 = vrot.slane %v659_v52, 7 }
 0x1bf   :  { %v1109_v3 = vld [vmem:[#allocation1] sm:$0xff] }
 0x1c0   :  { %1207 = vperm.xlu0 %1416, %v1109_v3   ;;  %1110 = vst [vmem:[#allocation1] ss:$9 sm:$0xff] %v656_v22  ;;  %v912_v22 = vrot.slane %v659_v52, 6 }
 0x1c1   :  { %1111 = vst [vmem:[#allocation1 + $0x1] ss:$9 sm:$0xff] %v886_v60  ;;  %v1154_v60 = vpop.permute.xlu2 %1153 }
 0x1c2   :  { %1112 = vst [vmem:[#allocation1 + $0x2] ss:$9 sm:$0xff] %v887_v62  ;;  %v1160_v62 = vpop.permute.xlu1 %1159 }
 0x1c3   :  { %1113 = vst [vmem:[#allocation1 + $0x3] ss:$9 sm:$0xff] %v888_v25  ;;  %v1157_v25 = vpop.permute.xlu0 %1156 }
 0x1c4   :  { %1114 = vst [vmem:[#allocation1 + $0x4] ss:$9 sm:$0xff] %v889_v26 }
 0x1c5   :  { %1115 = vst [vmem:[#allocation1 + $0x5] ss:$9 sm:$0xff] %v890_v50 }
 0x1c6   :  { %1116 = vst [vmem:[#allocation1 + $0x6] ss:$9 sm:$0xff] %v891_v6 }
 0x1c7   :  { %1117 = vst [vmem:[#allocation1 + $0x7] ss:$9 sm:$0xff] %v892_v10 }
 0x1c9   :  { %v1163_v42 = vpop.permute.xlu2 %1162 }
 0x1ca   :  { %v1166_v63 = vpop.permute.xlu1 %1165 }
 0x1cb   :  { %v1172_v26 = vpop.permute.xlu0 %1171 }
 0x1ce   :  { %v1118_v1 = vld [vmem:[#allocation1] sm:$0xff] }
 0x1cf   :  { %1210 = vperm.xlu2 %1414, %v1118_v1   ;;  %1119 = vst [vmem:[#allocation1] ss:$9 sm:$0xff] %v657_v59 }
 0x1d0   :  { %1120 = vst [vmem:[#allocation1 + $0x1] ss:$9 sm:$0xff] %v893_v18 }
 0x1d1   :  { %1121 = vst [vmem:[#allocation1 + $0x2] ss:$9 sm:$0xff] %v894_v19  ;;  %v1937_v3 = vpop.permute.xlu2 %1174 }
 0x1d2   :  { %1122 = vst [vmem:[#allocation1 + $0x3] ss:$9 sm:$0xff] %v895_v21  ;;  %v1169_v58 = vpop.permute.xlu1 %1168 }
 0x1d3   :  { %1123 = vst [vmem:[#allocation1 + $0x4] ss:$9 sm:$0xff] %v896_v2  ;;  %v1943_v6 = vpop.permute.xlu0 %1180 }
 0x1d4   :  { %1124 = vst [vmem:[#allocation1 + $0x5] ss:$9 sm:$0xff] %v897_v34 }
 0x1d5   :  { %1125 = vst [vmem:[#allocation1 + $0x6] ss:$9 sm:$0xff] %v898_v29 }
 0x1d6   :  { %1126 = vst [vmem:[#allocation1 + $0x7] ss:$9 sm:$0xff] %v899_v7 }
 0x1d9   :  { %v1939_v5 = vpop.permute.xlu2 %1183 }
 0x1da   :  { %v1941_v50 = vpop.permute.xlu1 %1177 }
 0x1dd   :  { %v1127_v41 = vld [vmem:[#allocation1] sm:$0xff] }
 0x1de   :  { %1213 = vperm.xlu1 %1415, %v1127_v41   ;;  %1128 = vst [vmem:[#allocation1] ss:$9 sm:$0xff] %v658_v38 }
 0x1df   :  { %1129 = vst [vmem:[#allocation1 + $0x1] ss:$9 sm:$0xff] %v900_v39 }
 0x1e0   :  { %1130 = vst [vmem:[#allocation1 + $0x2] ss:$9 sm:$0xff] %v901_v40 }
 0x1e1   :  { %1131 = vst [vmem:[#allocation1 + $0x3] ss:$9 sm:$0xff] %v902_v11  ;;  %v1196_v9 = vpop.permute.xlu2 %1195 }
 0x1e2   :  { %1132 = vst [vmem:[#allocation1 + $0x4] ss:$9 sm:$0xff] %v903_v45  ;;  %v1954_v14 = vpop.permute.xlu1 %1186 }
 0x1e3   :  { %1133 = vst [vmem:[#allocation1 + $0x5] ss:$9 sm:$0xff] %v904_v32 }
 0x1e4   :  { %1134 = vst [vmem:[#allocation1 + $0x6] ss:$9 sm:$0xff] %v905_v48 }
 0x1e5   :  { %1135 = vst [vmem:[#allocation1 + $0x7] ss:$9 sm:$0xff] %v906_v46 }
 0x1e6   :  { %1192 = vperm.xlu1 %1415, %v1840_v30  }
 0x1ec   :  { %v1136_v24 = vld [vmem:[#allocation1] sm:$0xff] }
 0x1ed   :  { %1216 = vperm.xlu0 %1416, %v1136_v24   ;;  %1137 = vst [vmem:[#allocation1] ss:$9 sm:$0xff] %v659_v52 }
 0x1ee   :  { %1138 = vst [vmem:[#allocation1 + $0x1] ss:$9 sm:$0xff] %v907_v17 }
 0x1ef   :  { %1139 = vst [vmem:[#allocation1 + $0x2] ss:$9 sm:$0xff] %v908_v33 }
 0x1f0   :  { %1140 = vst [vmem:[#allocation1 + $0x3] ss:$9 sm:$0xff] %v909_v53 }
 0x1f1   :  { %1141 = vst [vmem:[#allocation1 + $0x4] ss:$9 sm:$0xff] %v910_v55 }
 0x1f2   :  { %1142 = vst [vmem:[#allocation1 + $0x5] ss:$9 sm:$0xff] %v911_v37 }
 0x1f3   :  { %1143 = vst [vmem:[#allocation1 + $0x6] ss:$9 sm:$0xff] %v912_v22 }
 0x1f4   :  { %1144 = vst [vmem:[#allocation1 + $0x7] ss:$9 sm:$0xff] %v913_v56 }
 0x1f5   :  { %1189 = vperm.xlu0 %1416, %v1829_v8   ;;  %v1946_v8 = vand.u32 127, %v101_v0 }
 0x1f7   :  { %v1224_v27 = vadd.s32 4294967288, %v1946_v8  ;;  %v1228_v59 = vadd.s32 4294967280, %v1946_v8  ;;  %v1232_v18 = vadd.s32 4294967272, %v1946_v8  ;;  %v1236_v0 = vadd.s32 4294967264, %v1946_v8 }
 0x1f8   :  { %v1223_v19 = vperm.slane %v1148_v61, %v1946_v8  ;;  %v1240_v54 = vadd.s32 4294967256, %v1946_v8  ;;  %v1244_v34 = vadd.s32 4294967248, %v1946_v8  ;;  %v1248_v29 = vadd.s32 4294967240, %v1946_v8 }
 0x1f9   :  { %v1225_v16 = vperm.slane %v1151_v57, %v1224_v27  ;;  %v1229_v21 = vperm.slane %v1154_v60, %v1228_v59  ;;  %v1233_v2 = vperm.slane %v1157_v25, %v1232_v18  ;;  %v1237_v28 = vperm.slane %v1160_v62, %v1236_v0 }
 0x1fa   :  { %v1252_v31 = vadd.s32 4294967232, %v1946_v8  ;;  %v1284_v38 = vperm.slane %v1196_v9, %v1946_v8  ;;  %v1241_v13 = vperm.slane %v1163_v42, %v1240_v54  ;;  %v1245_v40 = vperm.slane %v1166_v63, %v1244_v34 }
 0x1fb   :  { %v1145_v30 = vld [vmem:[#allocation1] sm:$0xff]  ;;  %v1227_v1 = vsel %vm1226_vm2, %v1225_v16, %v1223_v19  ;;  %v1249_v11 = vperm.slane %v1169_v58, %v1248_v29  ;;  %v1260_v46 = vadd.s32 4294967216, %v1946_v8  ;;  %v1256_v52 = vadd.s32 4294967224, %v1946_v8 }
 0x1fc   :  { %1219 = vperm.xlu2 %1414, %v1145_v30   ;;  %v1202_v20 = vpop.permute.xlu2 %1201  ;;  %v1231_v7 = vsel %vm1230_vm3, %v1229_v21, %v1227_v1  ;;  %v1253_v45 = vperm.slane %v1172_v26, %v1252_v31  ;;  %v1264_v17 = vadd.s32 4294967208, %v1946_v8  ;;  %v1272_v42 = vadd.s32 4294967192, %v1946_v8 }
 0x1fd   :  { %v1235_v36 = vsel %vm1234_vm4, %v1233_v2, %v1231_v7  ;;  %v1287_v32 = vperm.slane %v1202_v20, %v1228_v59  ;;  %v1261_v30 = vperm.slane %v1941_v50, %v1260_v46  ;;  %v1257_v60 = vperm.slane %v1937_v3, %v1256_v52 }
 0x1fe   :  { %v1239_v39 = vsel %vm1238_vm5, %v1237_v28, %v1235_v36  ;;  %v1265_v62 = vperm.slane %v1943_v6, %v1264_v17  ;;  %v1268_v63 = vadd.s32 4294967200, %v1946_v8  ;;  %v1276_v3 = vadd.s32 4294967184, %v1946_v8 }
 0x1ff   :  { %v1243_v51 = vsel %vm1242_vm6, %v1241_v13, %v1239_v39  ;;  %v1273_v6 = vperm.slane %v1954_v14, %v1272_v42  ;;  %v1280_v59 = vadd.s32 4294967176, %v1946_v8  ;;  %v713_v14 = vld [vmem:[#allocation3] sm:$0x3] }
 0x200   :  { %v1247_v49 = vsel %vm1246_vm7, %v1245_v40, %v1243_v51  ;;  %v1269_v16 = vperm.slane %v1939_v5, %v1268_v63 }
 0x201   :  { %v1251_v53 = vsel %vm1250_vm8, %v1249_v11, %v1247_v49 }
 0x202   :  { %v1255_v55 = vsel %vm1254_vm9, %v1253_v45, %v1251_v53 }
 0x203   :  { %v1259_v26 = vsel %vm1258_vm10, %v1257_v60, %v1255_v55 }
 0x205   :  { %v1199_v15 = vpop.permute.xlu0 %1198 }
 0x206   :  { %v1285_v23 = vperm.slane %v1199_v15, %v1224_v27 }
 0x208   :  { %v1286_v41 = vsel %vm1226_vm2, %v1285_v23, %v1284_v38  ;;  %vm1302_vm2 = vcmask 1040384  }
 0x209   :  { %v1288_v33 = vsel %vm1230_vm3, %v1287_v32, %v1286_v41  ;;  %vm1331_vm3 = vcmask 581632  }
 0x223   :  { %v1205_v4 = vpop.permute.xlu1 %1204 }
 0x224   :  { %v1289_v44 = vperm.slane %v1205_v4, %v1232_v18 }
 0x225   :  { %1315 = vadd.xlane.f32.xlu2 %v1314_v12  ;;  %v1263_v12 = vsel %vm1262_vm11, %v1261_v30, %v1259_v26 }
 0x226   :  { %v1290_v24 = vsel %vm1234_vm4, %v1289_v44, %v1288_v33  ;;  %v1267_v27 = vsel %vm1266_vm12, %v1265_v62, %v1263_v12 }
 0x227   :  { %v1271_v20 = vsel %vm1270_vm13, %v1269_v16, %v1267_v27 }
 0x228   :  { %v1275_v1 = vsel %vm1274_vm14, %v1273_v6, %v1271_v20 }
 0x229   :  { %v1211_v43 = vpop.permute.xlu2 %1210 }
 0x22a   :  { %v1293_v61 = vperm.slane %v1211_v43, %v1240_v54 }
 0x232   :  { %v1208_v35 = vpop.permute.xlu0 %1207 }
 0x233   :  { %v1291_v48 = vperm.slane %v1208_v35, %v1236_v0 }
 0x235   :  { %v1292_v37 = vsel %vm1238_vm5, %v1291_v48, %v1290_v24 }
 0x236   :  { %v1294_v58 = vsel %vm1242_vm6, %v1293_v61, %v1292_v37 }
 0x250   :  { %v1214_v47 = vpop.permute.xlu1 %1213 }
 0x251   :  { %v1295_v22 = vperm.slane %v1214_v47, %v1244_v34 }
 0x253   :  { %v1296_v9 = vsel %vm1246_vm7, %v1295_v22, %v1294_v58 }
 0x256   :  { %v1220_v25 = vpop.permute.xlu2 %1219 }
 0x257   :  { %v1299_v15 = vperm.slane %v1220_v25, %v1252_v31 }
 0x258   :  { %v1193_v18 = vpop.permute.xlu1 %1192 }
 0x259   :  { %v1281_v2 = vperm.slane %v1193_v18, %v1280_v59 }
 0x25f   :  { %v1217_v56 = vpop.permute.xlu0 %1216 }
 0x260   :  { %v1297_v57 = vperm.slane %v1217_v56, %v1248_v29 }
 0x262   :  { %v1298_v50 = vsel %vm1250_vm8, %v1297_v57, %v1296_v9 }
 0x263   :  { %v1300_v0 = vsel %vm1254_vm9, %v1299_v15, %v1298_v50 }
 0x264   :  { %v1301_v4 = vrot.slane %v1300_v0, 7 }
 0x267   :  { %v1190_v19 = vpop.permute.xlu0 %1189 }
 0x268   :  { %v1277_v21 = vperm.slane %v1190_v19, %v1276_v3 }
 0x26a   :  { %v1279_v54 = vsel %vm1278_vm15, %v1277_v21, %v1275_v1 }
 0x26b   :  { %v1283_v28 = vsel %vm1282_vm0, %v1281_v2, %v1279_v54 }
 0x26c   :  { %v1303_v34 = vsel %vm1302_vm2, %v1283_v28, %v1301_v4 }
 0x26d   :  { %v1305_v8 = vadd.f32 %v1303_v34, %v713_v14 }
 0x26f   :  { %1310 = vst.msk [vmem:[#allocation3] sm:$0x3] %vm1949_vm1, %v1305_v8 }
 0x276   :  { %v1324_v5 = vld [vmem:[#allocation3] sm:$0x3] }
 0x277   :  { %v1326_v29 = vperm.slane %v1324_v5, 0  ;;  %v1327_v23 = vperm.slane %v1324_v5, 1 }
 0x279   :  { %v1330_v7 = vsel %vm1302_vm2, %v1326_v29, 0.0  ;;  %v1332_v31 = vsel %vm1331_vm3, %v1327_v23, 0.0 }
 0x27a   :  { %v1333_v35 = vadd.f32 %v1332_v31, %v1330_v7 }
 0x27c   :  { %1334 = vadd.xlane.f32.xlu0 %v1333_v35 }
 0x298   :  { %v1316_v36 = vpop.xlane.xlu2 %1315 }
 0x299   :  { %v1317_v38 = vrot.slane %v1316_v36, 4 }
 0x29b   :  { %v1318_v13 = vadd.f32 %v1317_v38, %v1316_v36 }
 0x29d   :  { %v1319_v39 = vrot.slane %v1318_v13, 2 }
 0x29f   :  { %v1320_v40 = vadd.f32 %v1319_v39, %v1318_v13 }
 0x2a1   :  { %v1321_v11 = vrot.slane %v1320_v40, 1 }
 0x2a3   :  { %v1322_v41 = vadd.f32 %v1321_v11, %v1320_v40 }
 0x2a5   :  { %1382 = vpush %v1322_v41 }
 0x2d6   :  { %s1383_s0 = spop %1382 }
 0x2d7   :  { %s1343_s4 = smul.f32 0.00015625, %s1383_s0 }
 0x2ef   :  { %v1335_v43 = vpop.xlane.xlu0 %1334 }
 0x2f0   :  { %v1336_v44 = vrot.slane %v1335_v43, 4 }
 0x2f2   :  { %v1337_v10 = vadd.f32 %v1336_v44, %v1335_v43 }
 0x2f4   :  { %v1338_v45 = vrot.slane %v1337_v10, 2 }
 0x2f6   :  { %v1339_v32 = vadd.f32 %v1338_v45, %v1337_v10 }
 0x2f8   :  { %v1340_v48 = vrot.slane %v1339_v32, 1 }
 0x2fa   :  { %v1341_v51 = vadd.f32 %v1340_v48, %v1339_v32 }
 0x2fc   :  { %1384 = vpush %v1341_v51 }
 0x32d   :  { %s1385_s5 = spop %1384 }
 0x32e   :  { %s1344_s6 = smul.f32 0.005, %s1385_s5 }
 0x330   :  { %s1345_s9 = sadd.f32 %s1344_s6, %s1343_s4 }
 0x332   :  { %v1346_v46 = vstv %s1345_s9 }
 0x333   :  { %1347 = vst [vmem:[#allocation4] sm:$0xff] %v1346_v46 }
 0x334   :  { %1358 = dma.vmem_to_hbm [thread:$0]  %s1354_s8, 128, %s1356_s30, [#allocation5]  }
 0x335   :  { %1541 = dma.done.wait [#allocation5], 128  }
 0x336   :  { %1542 = vsyncadd [#allocation5], 4294967168 }
 0x337   :  { %1363 = vsyncpa [#allocation5], 1 }

</bundles_post_ra>
